<compile_context>
chip_gen: v7x
topology: tpu7x:2x2x1
jax: 0.10.0
libtpu: 0.0.40
codegen_flags: <defaults>
</compile_context>

<pallas_src>
import functools
import math

import jax
import jax.numpy as jnp
from jax.experimental import pallas as pl
from jax.experimental.pallas import tpu as pltpu

F32 = jnp.float32
BF16 = jnp.bfloat16


def _mm(x, w):
    """MXU matmul: bf16 operands, f32 accumulation."""
    return jnp.dot(x.astype(BF16), w.astype(BF16), preferred_element_type=F32)


def _layer_norm(x, g_ref, b_ref, eps=1e-5):
    mu = jnp.mean(x, axis=-1, keepdims=True)
    var = jnp.mean(jnp.square(x - mu), axis=-1, keepdims=True)
    return (x - mu) * jax.lax.rsqrt(var + eps) * g_ref[...] + b_ref[...]


# ----------------------------- fused Pallas kernel (one batch element per grid step) -----------------------------

def fused_decoder_layer_kernel(
    tgt_ref, lowm_ref, highm_ref,
    wq_ref, wk_ref, wv_ref, wo_ref,
    bq_ref, bk_ref, bv_ref, bo_ref,
    w1_ref, b1_ref, w2_ref, b2_ref,
    g1_ref, be1_ref, g2_ref, be2_ref, g3_ref, be3_ref,
    out_ref, ws_ref,
    av_scratch,
    *, nhead, head_dim, scale, n_low):
    L, D = tgt_ref.shape                     # query rows are permuted: low-branch rows first

    t = tgt_ref[...].astype(F32)             # (L, D)
    t1 = _layer_norm(t, g1_ref, be1_ref)     # norm1(tgt); self-attn output is unused by forward_post

    # One shared Q projection for both branches (2-D weights, no batch broadcast).
    q_all = (_mm(t1, wq_ref[...]) + bq_ref[...]) * scale      # (L, D), pre-scaled

    def branch(row0, n_rows, mem_ref, need_weights):
        """Attention of query rows [row0, row0+n_rows) against mem_ref; per-head AV into scratch."""
        mem = mem_ref[...]
        k = _mm(mem, wk_ref[...]) + bk_ref[...]               # (N, D) f32
        v = _mm(mem, wv_ref[...]) + bv_ref[...]               # (N, D) f32
        q = q_all[row0:row0 + n_rows]                         # (n_rows, D) static slice
        wsum = None
        for h in range(nhead):                                # static, tiny head count
            lo = h * head_dim
            hi = lo + head_dim
            s = jnp.einsum('qd,kd->qk', q[:, lo:hi], k[:, lo:hi],
                           preferred_element_type=F32)        # f32 scores (feeds returned ws)
            s = s - jnp.max(s, axis=-1, keepdims=True)
            e = jnp.exp(s)
            p = e / jnp.sum(e, axis=-1, keepdims=True)        # exact softmax (ws accuracy)
            if need_weights:
                wsum = p if wsum is None else wsum + p
            av = jnp.einsum('qk,kd->qd', p.astype(BF16), v[:, lo:hi].astype(BF16),
                            preferred_element_type=F32)       # (n_rows, head_dim): standard per-head AV
            av_scratch[row0:row0 + n_rows, lo:hi] = av
        return wsum

    if n_low > 0:
        branch(0, n_low, lowm_ref, need_weights=False)        # low-branch ws discarded by the reference
    wsum = branch(n_low, L - n_low, highm_ref, need_weights=True)

    # Single output projection over the combined (L, D) per-head attention results (one Wo matmul).
    tgt2 = _mm(av_scratch[...], wo_ref[...]) + bo_ref[...]

    # norm2(norm1(tgt) + tgt2)
    t2 = _layer_norm(t1 + tgt2, g2_ref, be2_ref)

    # FFN + residual + norm3
    h1 = jnp.maximum(_mm(t2, w1_ref[...]) + b1_ref[...], 0.0)     # relu(linear1)
    y = _mm(h1, w2_ref[...]) + b2_ref[...]                        # linear2
    t3 = _layer_norm(t2 + y, g3_ref, be3_ref)

    out_ref[...] = t3.astype(out_ref.dtype)
    ws_ref[...] = (wsum * (1.0 / nhead)).astype(ws_ref.dtype)     # head-averaged high-branch weights


# ----------------------------- wrapper -----------------------------

def _resident_spec(shape):
    """Full-array block, same block index every grid step (weight stays resident in VMEM)."""
    nd = len(shape)
    return pl.BlockSpec(shape, lambda b, nd=nd: (0,) * nd)


def multi_transformer_decoder_layer_forward(params, tgt, high_memory, low_memory,
                                            low_level_idx, nhead):
    """forward_post semantics. tgt (L,B,D), memories (N,B,D) seq-first (PyTorch layout)."""
    L, B, D = tgt.shape
    Nh = high_memory.shape[0]
    Nl = low_memory.shape[0]
    assert D % nhead == 0
    head_dim = D // nhead

    low_idx = tuple(int(i) for i in low_level_idx)
    high_idx = tuple(i for i in range(L) if i not in low_idx)
    n_low, n_high = len(low_idx), len(high_idx)
    assert n_high > 0

    # Static query-row permutation: low-branch rows first, high-branch rows after. Inside the kernel
    # each branch then works on a contiguous row slab and ws is already the contiguous high-row block.
    perm = low_idx + high_idx
    inv_perm = [0] * L
    for pos, src in enumerate(perm):
        inv_perm[src] = pos
    perm_arr = jnp.asarray(perm, jnp.int32)
    inv_arr = jnp.asarray(inv_perm, jnp.int32)

    # Tiny layout plumbing outside the kernel (seq-first -> batch-first + static row permute).
    tgt_b = jnp.transpose(jnp.take(tgt, perm_arr, axis=0), (1, 0, 2))    # (B, L, D)
    low_b = jnp.transpose(low_memory, (1, 0, 2))                         # (B, Nl, D)
    high_b = jnp.transpose(high_memory, (1, 0, 2))                       # (B, Nh, D)

    kernel = functools.partial(
        fused_decoder_layer_kernel,
        nhead=nhead, head_dim=head_dim, scale=1.0 / math.sqrt(head_dim), n_low=n_low)

    weight_args = (params["wq"], params["wk"], params["wv"], params["wo"],
                   params["bq"], params["bk"], params["bv"], params["bo"],
                   params["w1"], params["b1"], params["w2"], params["b2"],
                   params["ln1_g"], params["ln1_b"], params["ln2_g"], params["ln2_b"],
                   params["ln3_g"], params["ln3_b"])

    in_specs = (
        [pl.BlockSpec((None, L, D), lambda b: (b, 0, 0)),
         pl.BlockSpec((None, Nl, D), lambda b: (b, 0, 0)),
         pl.BlockSpec((None, Nh, D), lambda b: (b, 0, 0))]
        + [_resident_spec(w.shape) for w in weight_args])

    out_b, ws = pl.pallas_call(
        kernel,
        grid=(B,),
        in_specs=in_specs,
        out_specs=(pl.BlockSpec((None, L, D), lambda b: (b, 0, 0)),
                   pl.BlockSpec((None, n_high, Nh), lambda b: (b, 0, 0))),
        out_shape=(jax.ShapeDtypeStruct((B, L, D), tgt.dtype),
                   jax.ShapeDtypeStruct((B, n_high, Nh), jnp.float32)),   # PyTorch returns fp32 weights
        scratch_shapes=[pltpu.VMEM((L, D), jnp.float32)],                 # per-head AV staging buffer
        compiler_params=pltpu.CompilerParams(dimension_semantics=("parallel",)),
    )(tgt_b, low_b, high_b, *weight_args)

    out = jnp.take(jnp.transpose(out_b, (1, 0, 2)), inv_arr, axis=0)      # back to (L, B, D), orig rows
    return out, ws                                                        # ws rows already in high_idx order


# ----------------------------- parameter init -----------------------------

def init_params(key, d_model, nhead, dim_feedforward):
    ks = jax.random.split(key, 6)
    s = 0.05
    f32 = jnp.float32

    def w(k, shape):                        # matmul weights stored pre-transposed (x @ W) and in bf16
        return (jax.random.normal(k, shape, f32) * s).astype(jnp.bfloat16)

    return {
        "wq": w(ks[0], (d_model, d_model)),
        "wk": w(ks[1], (d_model, d_model)),
        "wv": w(ks[2], (d_model, d_model)),
        "wo": w(ks[3], (d_model, d_model)),
        "bq": jnp.zeros((1, d_model), f32),
        "bk": jnp.zeros((1, d_model), f32),
        "bv": jnp.zeros((1, d_model), f32),
        "bo": jnp.zeros((1, d_model), f32),
        "w1": w(ks[4], (d_model, dim_feedforward)),
        "b1": jnp.zeros((1, dim_feedforward), f32),
        "w2": w(ks[5], (dim_feedforward, d_model)),
        "b2": jnp.zeros((1, d_model), f32),
        "ln1_g": jnp.ones((1, d_model), f32), "ln1_b": jnp.zeros((1, d_model), f32),
        "ln2_g": jnp.ones((1, d_model), f32), "ln2_b": jnp.zeros((1, d_model), f32),
        "ln3_g": jnp.ones((1, d_model), f32), "ln3_b": jnp.zeros((1, d_model), f32),
    }


# ----------------------------- demo -----------------------------

if __name__ == "__main__":
    d_model, nhead, dim_ff = 32, 4, 64
    L, B = 8, 2            # number of queries, batch
    N_high, N_low = 16, 4  # memory lengths
    low_level_idx = (0, 3)

    key = jax.random.PRNGKey(0)
    k_t, k_h, k_l, k_p = jax.random.split(key, 4)
    tgt = jax.random.normal(k_t, (L, B, d_model), jnp.float32)
    high_memory = jax.random.normal(k_h, (N_high, B, d_model), jnp.float32)
    low_memory = jax.random.normal(k_l, (N_low, B, d_model), jnp.float32)
    params = init_params(k_p, d_model, nhead, dim_ff)

    fwd = jax.jit(functools.partial(multi_transformer_decoder_layer_forward,
                                    low_level_idx=low_level_idx, nhead=nhead))
    out, ws = fwd(params, tgt, high_memory, low_memory)
    out = jax.block_until_ready(out)
    ws = jax.block_until_ready(ws)

    assert out.shape == (L, B, d_model)
    assert ws.shape == (B, L - len(low_level_idx), N_high)
    assert bool(jnp.all(jnp.isfinite(out))) and bool(jnp.all(jnp.isfinite(ws)))
    # attention weights are an exact softmax -> rows must sum to ~1
    assert bool(jnp.all(jnp.abs(jnp.sum(ws, axis=-1) - 1.0) < 1e-3))
    print("KERNEL_OK")
</pallas_src>

<mosaic_0001>
module attributes {stable_mosaic.version = 11 : i64} {
  func.func @fused_decoder_layer_kernel(%arg0: i32, %arg1: memref<1x8x32xf32, #tpu.memory_space<vmem>>, %arg2: memref<1x4x32xf32, #tpu.memory_space<vmem>>, %arg3: memref<1x16x32xf32, #tpu.memory_space<vmem>>, %arg4: memref<32x32xbf16, #tpu.memory_space<vmem>>, %arg5: memref<32x32xbf16, #tpu.memory_space<vmem>>, %arg6: memref<32x32xbf16, #tpu.memory_space<vmem>>, %arg7: memref<32x32xbf16, #tpu.memory_space<vmem>>, %arg8: memref<1x32xf32, #tpu.memory_space<vmem>>, %arg9: memref<1x32xf32, #tpu.memory_space<vmem>>, %arg10: memref<1x32xf32, #tpu.memory_space<vmem>>, %arg11: memref<1x32xf32, #tpu.memory_space<vmem>>, %arg12: memref<32x64xbf16, #tpu.memory_space<vmem>>, %arg13: memref<1x64xf32, #tpu.memory_space<vmem>>, %arg14: memref<64x32xbf16, #tpu.memory_space<vmem>>, %arg15: memref<1x32xf32, #tpu.memory_space<vmem>>, %arg16: memref<1x32xf32, #tpu.memory_space<vmem>>, %arg17: memref<1x32xf32, #tpu.memory_space<vmem>>, %arg18: memref<1x32xf32, #tpu.memory_space<vmem>>, %arg19: memref<1x32xf32, #tpu.memory_space<vmem>>, %arg20: memref<1x32xf32, #tpu.memory_space<vmem>>, %arg21: memref<1x32xf32, #tpu.memory_space<vmem>>, %arg22: memref<1x8x32xf32, #tpu.memory_space<vmem>>, %arg23: memref<1x6x16xf32, #tpu.memory_space<vmem>>, %arg24: memref<8x32xf32, #tpu.memory_space<vmem>>) attributes {dimension_semantics = [#tpu.dimension_semantics<parallel>], iteration_bounds = array<i64: 2>, scalar_prefetch = 0 : i64, scratch_operands = 1 : i64, tpu.core_type = #tpu.core_type<tc>, window_params = [{transform_indices = @transform_0, window_bounds = array<i64: 1, 8, 32>}, {transform_indices = @transform_1, window_bounds = array<i64: 1, 4, 32>}, {transform_indices = @transform_2, window_bounds = array<i64: 1, 16, 32>}, {pipeline_mode = #tpu.pipeline_mode<synchronous>, transform_indices = @transform_3, window_bounds = array<i64: 32, 32>}, {pipeline_mode = #tpu.pipeline_mode<synchronous>, transform_indices = @transform_4, window_bounds = array<i64: 32, 32>}, {pipeline_mode = #tpu.pipeline_mode<synchronous>, transform_indices = @transform_5, window_bounds = array<i64: 32, 32>}, {pipeline_mode = #tpu.pipeline_mode<synchronous>, transform_indices = @transform_6, window_bounds = array<i64: 32, 32>}, {pipeline_mode = #tpu.pipeline_mode<synchronous>, transform_indices = @transform_7, window_bounds = array<i64: 1, 32>}, {pipeline_mode = #tpu.pipeline_mode<synchronous>, transform_indices = @transform_8, window_bounds = array<i64: 1, 32>}, {pipeline_mode = #tpu.pipeline_mode<synchronous>, transform_indices = @transform_9, window_bounds = array<i64: 1, 32>}, {pipeline_mode = #tpu.pipeline_mode<synchronous>, transform_indices = @transform_10, window_bounds = array<i64: 1, 32>}, {pipeline_mode = #tpu.pipeline_mode<synchronous>, transform_indices = @transform_11, window_bounds = array<i64: 32, 64>}, {pipeline_mode = #tpu.pipeline_mode<synchronous>, transform_indices = @transform_12, window_bounds = array<i64: 1, 64>}, {pipeline_mode = #tpu.pipeline_mode<synchronous>, transform_indices = @transform_13, window_bounds = array<i64: 64, 32>}, {pipeline_mode = #tpu.pipeline_mode<synchronous>, transform_indices = @transform_14, window_bounds = array<i64: 1, 32>}, {pipeline_mode = #tpu.pipeline_mode<synchronous>, transform_indices = @transform_15, window_bounds = array<i64: 1, 32>}, {pipeline_mode = #tpu.pipeline_mode<synchronous>, transform_indices = @transform_16, window_bounds = array<i64: 1, 32>}, {pipeline_mode = #tpu.pipeline_mode<synchronous>, transform_indices = @transform_17, window_bounds = array<i64: 1, 32>}, {pipeline_mode = #tpu.pipeline_mode<synchronous>, transform_indices = @transform_18, window_bounds = array<i64: 1, 32>}, {pipeline_mode = #tpu.pipeline_mode<synchronous>, transform_indices = @transform_19, window_bounds = array<i64: 1, 32>}, {pipeline_mode = #tpu.pipeline_mode<synchronous>, transform_indices = @transform_20, window_bounds = array<i64: 1, 32>}, {transform_indices = @transform_21, window_bounds = array<i64: 1, 8, 32>}, {transform_indices = @transform_22, window_bounds = array<i64: 1, 6, 16>}]} {
    %c0 = arith.constant 0 : index
    %c0_0 = arith.constant 0 : index
    %c0_1 = arith.constant 0 : index
    %0 = vector.load %arg1[%c0, %c0_0, %c0_1] : memref<1x8x32xf32, #tpu.memory_space<vmem>>, vector<1x8x32xf32>
    %1 = vector.shape_cast %0 : vector<1x8x32xf32> to vector<8x32xf32>
    %cst = arith.constant dense<0.000000e+00> : vector<8xf32>
    %2 = vector.multi_reduction <add>, %1, %cst [1] : vector<8x32xf32> to vector<8xf32>
    %3 = vector.shape_cast %2 : vector<8xf32> to vector<8x1xf32>
    %cst_2 = arith.constant 3.200000e+01 : f32
    %4 = vector.broadcast %cst_2 : f32 to vector<8x1xf32>
    %5 = arith.divf %3, %4 : vector<8x1xf32>
    %6 = vector.broadcast %5 : vector<8x1xf32> to vector<8x32xf32>
    %7 = arith.subf %1, %6 : vector<8x32xf32>
    %8 = arith.mulf %7, %7 : vector<8x32xf32>
    %cst_3 = arith.constant dense<0.000000e+00> : vector<8xf32>
    %9 = vector.multi_reduction <add>, %8, %cst_3 [1] : vector<8x32xf32> to vector<8xf32>
    %10 = vector.shape_cast %9 : vector<8xf32> to vector<8x1xf32>
    %cst_4 = arith.constant 3.200000e+01 : f32
    %11 = vector.broadcast %cst_4 : f32 to vector<8x1xf32>
    %12 = arith.divf %10, %11 : vector<8x1xf32>
    %13 = vector.broadcast %5 : vector<8x1xf32> to vector<8x32xf32>
    %14 = arith.subf %1, %13 : vector<8x32xf32>
    %cst_5 = arith.constant 9.99999974E-6 : f32
    %15 = vector.broadcast %cst_5 : f32 to vector<8x1xf32>
    %16 = arith.addf %12, %15 : vector<8x1xf32>
    %17 = math.rsqrt %16 : vector<8x1xf32>
    %18 = vector.broadcast %17 : vector<8x1xf32> to vector<8x32xf32>
    %19 = arith.mulf %14, %18 : vector<8x32xf32>
    %c0_6 = arith.constant 0 : index
    %c0_7 = arith.constant 0 : index
    %20 = vector.load %arg16[%c0_6, %c0_7] : memref<1x32xf32, #tpu.memory_space<vmem>>, vector<1x32xf32>
    %21 = vector.broadcast %20 : vector<1x32xf32> to vector<8x32xf32>
    %22 = arith.mulf %19, %21 : vector<8x32xf32>
    %c0_8 = arith.constant 0 : index
    %c0_9 = arith.constant 0 : index
    %23 = vector.load %arg17[%c0_8, %c0_9] : memref<1x32xf32, #tpu.memory_space<vmem>>, vector<1x32xf32>
    %24 = vector.broadcast %23 : vector<1x32xf32> to vector<8x32xf32>
    %25 = arith.addf %22, %24 : vector<8x32xf32>
    %c0_10 = arith.constant 0 : index
    %c0_11 = arith.constant 0 : index
    %26 = vector.load %arg4[%c0_10, %c0_11] : memref<32x32xbf16, #tpu.memory_space<vmem>>, vector<32x32xbf16>
    %27 = arith.truncf %25 : vector<8x32xf32> to vector<8x32xbf16>
    %cst_12 = arith.constant dense<0.000000e+00> : vector<8x32xf32>
    %28 = tpu.matmul %27, %26, %cst_12 {dimension_numbers = #tpu.dot_dimension_numbers<[1], [0], [0], [1], [0, 0, 1, 1], [], []>} : vector<8x32xbf16>, vector<32x32xbf16>, vector<8x32xf32> -> vector<8x32xf32>
    %c0_13 = arith.constant 0 : index
    %c0_14 = arith.constant 0 : index
    %29 = vector.load %arg8[%c0_13, %c0_14] : memref<1x32xf32, #tpu.memory_space<vmem>>, vector<1x32xf32>
    %30 = vector.broadcast %29 : vector<1x32xf32> to vector<8x32xf32>
    %31 = arith.addf %28, %30 : vector<8x32xf32>
    %cst_15 = arith.constant 0.353553385 : f32
    %32 = vector.broadcast %cst_15 : f32 to vector<8x32xf32>
    %33 = arith.mulf %31, %32 : vector<8x32xf32>
    %c0_16 = arith.constant 0 : index
    %c0_17 = arith.constant 0 : index
    %c0_18 = arith.constant 0 : index
    %34 = vector.load %arg2[%c0_16, %c0_17, %c0_18] : memref<1x4x32xf32, #tpu.memory_space<vmem>>, vector<1x4x32xf32>
    %35 = vector.shape_cast %34 : vector<1x4x32xf32> to vector<4x32xf32>
    %c0_19 = arith.constant 0 : index
    %c0_20 = arith.constant 0 : index
    %36 = vector.load %arg5[%c0_19, %c0_20] : memref<32x32xbf16, #tpu.memory_space<vmem>>, vector<32x32xbf16>
    %37 = arith.truncf %35 : vector<4x32xf32> to vector<4x32xbf16>
    %cst_21 = arith.constant dense<0.000000e+00> : vector<4x32xf32>
    %38 = tpu.matmul %37, %36, %cst_21 {dimension_numbers = #tpu.dot_dimension_numbers<[1], [0], [0], [1], [0, 0, 1, 1], [], []>} : vector<4x32xbf16>, vector<32x32xbf16>, vector<4x32xf32> -> vector<4x32xf32>
    %c0_22 = arith.constant 0 : index
    %c0_23 = arith.constant 0 : index
    %39 = vector.load %arg9[%c0_22, %c0_23] : memref<1x32xf32, #tpu.memory_space<vmem>>, vector<1x32xf32>
    %40 = vector.broadcast %39 : vector<1x32xf32> to vector<4x32xf32>
    %41 = arith.addf %38, %40 : vector<4x32xf32>
    %c0_24 = arith.constant 0 : index
    %c0_25 = arith.constant 0 : index
    %42 = vector.load %arg6[%c0_24, %c0_25] : memref<32x32xbf16, #tpu.memory_space<vmem>>, vector<32x32xbf16>
    %43 = arith.truncf %35 : vector<4x32xf32> to vector<4x32xbf16>
    %cst_26 = arith.constant dense<0.000000e+00> : vector<4x32xf32>
    %44 = tpu.matmul %43, %42, %cst_26 {dimension_numbers = #tpu.dot_dimension_numbers<[1], [0], [0], [1], [0, 0, 1, 1], [], []>} : vector<4x32xbf16>, vector<32x32xbf16>, vector<4x32xf32> -> vector<4x32xf32>
    %c0_27 = arith.constant 0 : index
    %c0_28 = arith.constant 0 : index
    %45 = vector.load %arg10[%c0_27, %c0_28] : memref<1x32xf32, #tpu.memory_space<vmem>>, vector<1x32xf32>
    %46 = vector.broadcast %45 : vector<1x32xf32> to vector<4x32xf32>
    %47 = arith.addf %44, %46 : vector<4x32xf32>
    %48 = vector.extract_strided_slice %33 {offsets = [0, 0], sizes = [2, 32], strides = [1, 1]} : vector<8x32xf32> to vector<2x32xf32>
    %49 = vector.extract_strided_slice %48 {offsets = [0, 0], sizes = [2, 8], strides = [1, 1]} : vector<2x32xf32> to vector<2x8xf32>
    %50 = vector.extract_strided_slice %41 {offsets = [0, 0], sizes = [4, 8], strides = [1, 1]} : vector<4x32xf32> to vector<4x8xf32>
    "tpu.trace_start"() <{level = 10 : i32, message = "qd,kd->qk"}> : () -> ()
    %cst_29 = arith.constant dense<0.000000e+00> : vector<2x4xf32>
    %51 = tpu.matmul %49, %50, %cst_29 {dimension_numbers = #tpu.dot_dimension_numbers<[1], [1], [0], [0], [0, 0, 1, 0], [], []>} : vector<2x8xf32>, vector<4x8xf32>, vector<2x4xf32> -> vector<2x4xf32>
    "tpu.trace_stop"() : () -> ()
    %cst_30 = arith.constant dense<0xFF800000> : vector<2xf32>
    %52 = vector.multi_reduction <maximumf>, %51, %cst_30 [1] : vector<2x4xf32> to vector<2xf32>
    %53 = vector.shape_cast %52 : vector<2xf32> to vector<2x1xf32>
    %54 = vector.broadcast %53 : vector<2x1xf32> to vector<2x4xf32>
    %55 = arith.subf %51, %54 : vector<2x4xf32>
    %56 = math.exp %55 : vector<2x4xf32>
    %cst_31 = arith.constant dense<0.000000e+00> : vector<2xf32>
    %57 = vector.multi_reduction <add>, %56, %cst_31 [1] : vector<2x4xf32> to vector<2xf32>
    %58 = vector.shape_cast %57 : vector<2xf32> to vector<2x1xf32>
    %59 = vector.broadcast %58 : vector<2x1xf32> to vector<2x4xf32>
    %60 = arith.divf %56, %59 : vector<2x4xf32>
    %61 = arith.truncf %60 : vector<2x4xf32> to vector<2x4xbf16>
    %62 = vector.extract_strided_slice %47 {offsets = [0, 0], sizes = [4, 8], strides = [1, 1]} : vector<4x32xf32> to vector<4x8xf32>
    %63 = arith.truncf %62 : vector<4x8xf32> to vector<4x8xbf16>
    "tpu.trace_start"() <{level = 10 : i32, message = "qk,kd->qd"}> : () -> ()
    %cst_32 = arith.constant dense<0.000000e+00> : vector<2x8xf32>
    %64 = tpu.matmul %61, %63, %cst_32 {dimension_numbers = #tpu.dot_dimension_numbers<[1], [0], [0], [1], [0, 0, 1, 1], [], []>} : vector<2x4xbf16>, vector<4x8xbf16>, vector<2x8xf32> -> vector<2x8xf32>
    "tpu.trace_stop"() : () -> ()
    %c0_33 = arith.constant 0 : index
    %c0_34 = arith.constant 0 : index
    %65 = vector.load %arg24[%c0_33, %c0_34] : memref<8x32xf32, #tpu.memory_space<vmem>>, vector<2x8xf32>
    tpu.vector_store %arg24[%c0_33, %c0_34], %64 {strides = array<i32>} : memref<8x32xf32, #tpu.memory_space<vmem>>, vector<2x8xf32>,
    %66 = vector.extract_strided_slice %48 {offsets = [0, 8], sizes = [2, 8], strides = [1, 1]} : vector<2x32xf32> to vector<2x8xf32>
    %67 = vector.extract_strided_slice %41 {offsets = [0, 8], sizes = [4, 8], strides = [1, 1]} : vector<4x32xf32> to vector<4x8xf32>
    "tpu.trace_start"() <{level = 10 : i32, message = "qd,kd->qk"}> : () -> ()
    %cst_35 = arith.constant dense<0.000000e+00> : vector<2x4xf32>
    %68 = tpu.matmul %66, %67, %cst_35 {dimension_numbers = #tpu.dot_dimension_numbers<[1], [1], [0], [0], [0, 0, 1, 0], [], []>} : vector<2x8xf32>, vector<4x8xf32>, vector<2x4xf32> -> vector<2x4xf32>
    "tpu.trace_stop"() : () -> ()
    %cst_36 = arith.constant dense<0xFF800000> : vector<2xf32>
    %69 = vector.multi_reduction <maximumf>, %68, %cst_36 [1] : vector<2x4xf32> to vector<2xf32>
    %70 = vector.shape_cast %69 : vector<2xf32> to vector<2x1xf32>
    %71 = vector.broadcast %70 : vector<2x1xf32> to vector<2x4xf32>
    %72 = arith.subf %68, %71 : vector<2x4xf32>
    %73 = math.exp %72 : vector<2x4xf32>
    %cst_37 = arith.constant dense<0.000000e+00> : vector<2xf32>
    %74 = vector.multi_reduction <add>, %73, %cst_37 [1] : vector<2x4xf32> to vector<2xf32>
    %75 = vector.shape_cast %74 : vector<2xf32> to vector<2x1xf32>
    %76 = vector.broadcast %75 : vector<2x1xf32> to vector<2x4xf32>
    %77 = arith.divf %73, %76 : vector<2x4xf32>
    %78 = arith.truncf %77 : vector<2x4xf32> to vector<2x4xbf16>
    %79 = vector.extract_strided_slice %47 {offsets = [0, 8], sizes = [4, 8], strides = [1, 1]} : vector<4x32xf32> to vector<4x8xf32>
    %80 = arith.truncf %79 : vector<4x8xf32> to vector<4x8xbf16>
    "tpu.trace_start"() <{level = 10 : i32, message = "qk,kd->qd"}> : () -> ()
    %cst_38 = arith.constant dense<0.000000e+00> : vector<2x8xf32>
    %81 = tpu.matmul %78, %80, %cst_38 {dimension_numbers = #tpu.dot_dimension_numbers<[1], [0], [0], [1], [0, 0, 1, 1], [], []>} : vector<2x4xbf16>, vector<4x8xbf16>, vector<2x8xf32> -> vector<2x8xf32>
    "tpu.trace_stop"() : () -> ()
    %c0_39 = arith.constant 0 : index
    %c8 = arith.constant 8 : index
    %82 = vector.load %arg24[%c0_39, %c8] : memref<8x32xf32, #tpu.memory_space<vmem>>, vector<2x8xf32>
    tpu.vector_store %arg24[%c0_39, %c8], %81 {strides = array<i32>} : memref<8x32xf32, #tpu.memory_space<vmem>>, vector<2x8xf32>,
    %83 = vector.extract_strided_slice %48 {offsets = [0, 16], sizes = [2, 8], strides = [1, 1]} : vector<2x32xf32> to vector<2x8xf32>
    %84 = vector.extract_strided_slice %41 {offsets = [0, 16], sizes = [4, 8], strides = [1, 1]} : vector<4x32xf32> to vector<4x8xf32>
    "tpu.trace_start"() <{level = 10 : i32, message = "qd,kd->qk"}> : () -> ()
    %cst_40 = arith.constant dense<0.000000e+00> : vector<2x4xf32>
    %85 = tpu.matmul %83, %84, %cst_40 {dimension_numbers = #tpu.dot_dimension_numbers<[1], [1], [0], [0], [0, 0, 1, 0], [], []>} : vector<2x8xf32>, vector<4x8xf32>, vector<2x4xf32> -> vector<2x4xf32>
    "tpu.trace_stop"() : () -> ()
    %cst_41 = arith.constant dense<0xFF800000> : vector<2xf32>
    %86 = vector.multi_reduction <maximumf>, %85, %cst_41 [1] : vector<2x4xf32> to vector<2xf32>
    %87 = vector.shape_cast %86 : vector<2xf32> to vector<2x1xf32>
    %88 = vector.broadcast %87 : vector<2x1xf32> to vector<2x4xf32>
    %89 = arith.subf %85, %88 : vector<2x4xf32>
    %90 = math.exp %89 : vector<2x4xf32>
    %cst_42 = arith.constant dense<0.000000e+00> : vector<2xf32>
    %91 = vector.multi_reduction <add>, %90, %cst_42 [1] : vector<2x4xf32> to vector<2xf32>
    %92 = vector.shape_cast %91 : vector<2xf32> to vector<2x1xf32>
    %93 = vector.broadcast %92 : vector<2x1xf32> to vector<2x4xf32>
    %94 = arith.divf %90, %93 : vector<2x4xf32>
    %95 = arith.truncf %94 : vector<2x4xf32> to vector<2x4xbf16>
    %96 = vector.extract_strided_slice %47 {offsets = [0, 16], sizes = [4, 8], strides = [1, 1]} : vector<4x32xf32> to vector<4x8xf32>
    %97 = arith.truncf %96 : vector<4x8xf32> to vector<4x8xbf16>
    "tpu.trace_start"() <{level = 10 : i32, message = "qk,kd->qd"}> : () -> ()
    %cst_43 = arith.constant dense<0.000000e+00> : vector<2x8xf32>
    %98 = tpu.matmul %95, %97, %cst_43 {dimension_numbers = #tpu.dot_dimension_numbers<[1], [0], [0], [1], [0, 0, 1, 1], [], []>} : vector<2x4xbf16>, vector<4x8xbf16>, vector<2x8xf32> -> vector<2x8xf32>
    "tpu.trace_stop"() : () -> ()
    %c0_44 = arith.constant 0 : index
    %c16 = arith.constant 16 : index
    %99 = vector.load %arg24[%c0_44, %c16] : memref<8x32xf32, #tpu.memory_space<vmem>>, vector<2x8xf32>
    tpu.vector_store %arg24[%c0_44, %c16], %98 {strides = array<i32>} : memref<8x32xf32, #tpu.memory_space<vmem>>, vector<2x8xf32>,
    %100 = vector.extract_strided_slice %48 {offsets = [0, 24], sizes = [2, 8], strides = [1, 1]} : vector<2x32xf32> to vector<2x8xf32>
    %101 = vector.extract_strided_slice %41 {offsets = [0, 24], sizes = [4, 8], strides = [1, 1]} : vector<4x32xf32> to vector<4x8xf32>
    "tpu.trace_start"() <{level = 10 : i32, message = "qd,kd->qk"}> : () -> ()
    %cst_45 = arith.constant dense<0.000000e+00> : vector<2x4xf32>
    %102 = tpu.matmul %100, %101, %cst_45 {dimension_numbers = #tpu.dot_dimension_numbers<[1], [1], [0], [0], [0, 0, 1, 0], [], []>} : vector<2x8xf32>, vector<4x8xf32>, vector<2x4xf32> -> vector<2x4xf32>
    "tpu.trace_stop"() : () -> ()
    %cst_46 = arith.constant dense<0xFF800000> : vector<2xf32>
    %103 = vector.multi_reduction <maximumf>, %102, %cst_46 [1] : vector<2x4xf32> to vector<2xf32>
    %104 = vector.shape_cast %103 : vector<2xf32> to vector<2x1xf32>
    %105 = vector.broadcast %104 : vector<2x1xf32> to vector<2x4xf32>
    %106 = arith.subf %102, %105 : vector<2x4xf32>
    %107 = math.exp %106 : vector<2x4xf32>
    %cst_47 = arith.constant dense<0.000000e+00> : vector<2xf32>
    %108 = vector.multi_reduction <add>, %107, %cst_47 [1] : vector<2x4xf32> to vector<2xf32>
    %109 = vector.shape_cast %108 : vector<2xf32> to vector<2x1xf32>
    %110 = vector.broadcast %109 : vector<2x1xf32> to vector<2x4xf32>
    %111 = arith.divf %107, %110 : vector<2x4xf32>
    %112 = arith.truncf %111 : vector<2x4xf32> to vector<2x4xbf16>
    %113 = vector.extract_strided_slice %47 {offsets = [0, 24], sizes = [4, 8], strides = [1, 1]} : vector<4x32xf32> to vector<4x8xf32>
    %114 = arith.truncf %113 : vector<4x8xf32> to vector<4x8xbf16>
    "tpu.trace_start"() <{level = 10 : i32, message = "qk,kd->qd"}> : () -> ()
    %cst_48 = arith.constant dense<0.000000e+00> : vector<2x8xf32>
    %115 = tpu.matmul %112, %114, %cst_48 {dimension_numbers = #tpu.dot_dimension_numbers<[1], [0], [0], [1], [0, 0, 1, 1], [], []>} : vector<2x4xbf16>, vector<4x8xbf16>, vector<2x8xf32> -> vector<2x8xf32>
    "tpu.trace_stop"() : () -> ()
    %c0_49 = arith.constant 0 : index
    %c24 = arith.constant 24 : index
    %116 = vector.load %arg24[%c0_49, %c24] : memref<8x32xf32, #tpu.memory_space<vmem>>, vector<2x8xf32>
    tpu.vector_store %arg24[%c0_49, %c24], %115 {strides = array<i32>} : memref<8x32xf32, #tpu.memory_space<vmem>>, vector<2x8xf32>,
    %c0_50 = arith.constant 0 : index
    %c0_51 = arith.constant 0 : index
    %c0_52 = arith.constant 0 : index
    %117 = vector.load %arg3[%c0_50, %c0_51, %c0_52] : memref<1x16x32xf32, #tpu.memory_space<vmem>>, vector<1x16x32xf32>
    %118 = vector.shape_cast %117 : vector<1x16x32xf32> to vector<16x32xf32>
    %c0_53 = arith.constant 0 : index
    %c0_54 = arith.constant 0 : index
    %119 = vector.load %arg5[%c0_53, %c0_54] : memref<32x32xbf16, #tpu.memory_space<vmem>>, vector<32x32xbf16>
    %120 = arith.truncf %118 : vector<16x32xf32> to vector<16x32xbf16>
    %cst_55 = arith.constant dense<0.000000e+00> : vector<16x32xf32>
    %121 = tpu.matmul %120, %119, %cst_55 {dimension_numbers = #tpu.dot_dimension_numbers<[1], [0], [0], [1], [0, 0, 1, 1], [], []>} : vector<16x32xbf16>, vector<32x32xbf16>, vector<16x32xf32> -> vector<16x32xf32>
    %c0_56 = arith.constant 0 : index
    %c0_57 = arith.constant 0 : index
    %122 = vector.load %arg9[%c0_56, %c0_57] : memref<1x32xf32, #tpu.memory_space<vmem>>, vector<1x32xf32>
    %123 = vector.broadcast %122 : vector<1x32xf32> to vector<16x32xf32>
    %124 = arith.addf %121, %123 : vector<16x32xf32>
    %c0_58 = arith.constant 0 : index
    %c0_59 = arith.constant 0 : index
    %125 = vector.load %arg6[%c0_58, %c0_59] : memref<32x32xbf16, #tpu.memory_space<vmem>>, vector<32x32xbf16>
    %126 = arith.truncf %118 : vector<16x32xf32> to vector<16x32xbf16>
    %cst_60 = arith.constant dense<0.000000e+00> : vector<16x32xf32>
    %127 = tpu.matmul %126, %125, %cst_60 {dimension_numbers = #tpu.dot_dimension_numbers<[1], [0], [0], [1], [0, 0, 1, 1], [], []>} : vector<16x32xbf16>, vector<32x32xbf16>, vector<16x32xf32> -> vector<16x32xf32>
    %c0_61 = arith.constant 0 : index
    %c0_62 = arith.constant 0 : index
    %128 = vector.load %arg10[%c0_61, %c0_62] : memref<1x32xf32, #tpu.memory_space<vmem>>, vector<1x32xf32>
    %129 = vector.broadcast %128 : vector<1x32xf32> to vector<16x32xf32>
    %130 = arith.addf %127, %129 : vector<16x32xf32>
    %131 = vector.extract_strided_slice %33 {offsets = [2, 0], sizes = [6, 32], strides = [1, 1]} : vector<8x32xf32> to vector<6x32xf32>
    %132 = vector.extract_strided_slice %131 {offsets = [0, 0], sizes = [6, 8], strides = [1, 1]} : vector<6x32xf32> to vector<6x8xf32>
    %133 = vector.extract_strided_slice %124 {offsets = [0, 0], sizes = [16, 8], strides = [1, 1]} : vector<16x32xf32> to vector<16x8xf32>
    "tpu.trace_start"() <{level = 10 : i32, message = "qd,kd->qk"}> : () -> ()
    %cst_63 = arith.constant dense<0.000000e+00> : vector<6x16xf32>
    %134 = tpu.matmul %132, %133, %cst_63 {dimension_numbers = #tpu.dot_dimension_numbers<[1], [1], [0], [0], [0, 0, 1, 0], [], []>} : vector<6x8xf32>, vector<16x8xf32>, vector<6x16xf32> -> vector<6x16xf32>
    "tpu.trace_stop"() : () -> ()
    %cst_64 = arith.constant dense<0xFF800000> : vector<6xf32>
    %135 = vector.multi_reduction <maximumf>, %134, %cst_64 [1] : vector<6x16xf32> to vector<6xf32>
    %136 = vector.shape_cast %135 : vector<6xf32> to vector<6x1xf32>
    %137 = vector.broadcast %136 : vector<6x1xf32> to vector<6x16xf32>
    %138 = arith.subf %134, %137 : vector<6x16xf32>
    %139 = math.exp %138 : vector<6x16xf32>
    %cst_65 = arith.constant dense<0.000000e+00> : vector<6xf32>
    %140 = vector.multi_reduction <add>, %139, %cst_65 [1] : vector<6x16xf32> to vector<6xf32>
    %141 = vector.shape_cast %140 : vector<6xf32> to vector<6x1xf32>
    %142 = vector.broadcast %141 : vector<6x1xf32> to vector<6x16xf32>
    %143 = arith.divf %139, %142 : vector<6x16xf32>
    %144 = arith.truncf %143 : vector<6x16xf32> to vector<6x16xbf16>
    %145 = vector.extract_strided_slice %130 {offsets = [0, 0], sizes = [16, 8], strides = [1, 1]} : vector<16x32xf32> to vector<16x8xf32>
    %146 = arith.truncf %145 : vector<16x8xf32> to vector<16x8xbf16>
    "tpu.trace_start"() <{level = 10 : i32, message = "qk,kd->qd"}> : () -> ()
    %cst_66 = arith.constant dense<0.000000e+00> : vector<6x8xf32>
    %147 = tpu.matmul %144, %146, %cst_66 {dimension_numbers = #tpu.dot_dimension_numbers<[1], [0], [0], [1], [0, 0, 1, 1], [], []>} : vector<6x16xbf16>, vector<16x8xbf16>, vector<6x8xf32> -> vector<6x8xf32>
    "tpu.trace_stop"() : () -> ()
    %c2 = arith.constant 2 : index
    %c0_67 = arith.constant 0 : index
    %148 = vector.load %arg24[%c2, %c0_67] : memref<8x32xf32, #tpu.memory_space<vmem>>, vector<6x8xf32>
    tpu.vector_store %arg24[%c2, %c0_67], %147 {strides = array<i32>} : memref<8x32xf32, #tpu.memory_space<vmem>>, vector<6x8xf32>,
    %149 = vector.extract_strided_slice %131 {offsets = [0, 8], sizes = [6, 8], strides = [1, 1]} : vector<6x32xf32> to vector<6x8xf32>
    %150 = vector.extract_strided_slice %124 {offsets = [0, 8], sizes = [16, 8], strides = [1, 1]} : vector<16x32xf32> to vector<16x8xf32>
    "tpu.trace_start"() <{level = 10 : i32, message = "qd,kd->qk"}> : () -> ()
    %cst_68 = arith.constant dense<0.000000e+00> : vector<6x16xf32>
    %151 = tpu.matmul %149, %150, %cst_68 {dimension_numbers = #tpu.dot_dimension_numbers<[1], [1], [0], [0], [0, 0, 1, 0], [], []>} : vector<6x8xf32>, vector<16x8xf32>, vector<6x16xf32> -> vector<6x16xf32>
    "tpu.trace_stop"() : () -> ()
    %cst_69 = arith.constant dense<0xFF800000> : vector<6xf32>
    %152 = vector.multi_reduction <maximumf>, %151, %cst_69 [1] : vector<6x16xf32> to vector<6xf32>
    %153 = vector.shape_cast %152 : vector<6xf32> to vector<6x1xf32>
    %154 = vector.broadcast %153 : vector<6x1xf32> to vector<6x16xf32>
    %155 = arith.subf %151, %154 : vector<6x16xf32>
    %156 = math.exp %155 : vector<6x16xf32>
    %cst_70 = arith.constant dense<0.000000e+00> : vector<6xf32>
    %157 = vector.multi_reduction <add>, %156, %cst_70 [1] : vector<6x16xf32> to vector<6xf32>
    %158 = vector.shape_cast %157 : vector<6xf32> to vector<6x1xf32>
    %159 = vector.broadcast %158 : vector<6x1xf32> to vector<6x16xf32>
    %160 = arith.divf %156, %159 : vector<6x16xf32>
    %161 = arith.addf %143, %160 : vector<6x16xf32>
    %162 = arith.truncf %160 : vector<6x16xf32> to vector<6x16xbf16>
    %163 = vector.extract_strided_slice %130 {offsets = [0, 8], sizes = [16, 8], strides = [1, 1]} : vector<16x32xf32> to vector<16x8xf32>
    %164 = arith.truncf %163 : vector<16x8xf32> to vector<16x8xbf16>
    "tpu.trace_start"() <{level = 10 : i32, message = "qk,kd->qd"}> : () -> ()
    %cst_71 = arith.constant dense<0.000000e+00> : vector<6x8xf32>
    %165 = tpu.matmul %162, %164, %cst_71 {dimension_numbers = #tpu.dot_dimension_numbers<[1], [0], [0], [1], [0, 0, 1, 1], [], []>} : vector<6x16xbf16>, vector<16x8xbf16>, vector<6x8xf32> -> vector<6x8xf32>
    "tpu.trace_stop"() : () -> ()
    %c2_72 = arith.constant 2 : index
    %c8_73 = arith.constant 8 : index
    %166 = vector.load %arg24[%c2_72, %c8_73] : memref<8x32xf32, #tpu.memory_space<vmem>>, vector<6x8xf32>
    tpu.vector_store %arg24[%c2_72, %c8_73], %165 {strides = array<i32>} : memref<8x32xf32, #tpu.memory_space<vmem>>, vector<6x8xf32>,
    %167 = vector.extract_strided_slice %131 {offsets = [0, 16], sizes = [6, 8], strides = [1, 1]} : vector<6x32xf32> to vector<6x8xf32>
    %168 = vector.extract_strided_slice %124 {offsets = [0, 16], sizes = [16, 8], strides = [1, 1]} : vector<16x32xf32> to vector<16x8xf32>
    "tpu.trace_start"() <{level = 10 : i32, message = "qd,kd->qk"}> : () -> ()
    %cst_74 = arith.constant dense<0.000000e+00> : vector<6x16xf32>
    %169 = tpu.matmul %167, %168, %cst_74 {dimension_numbers = #tpu.dot_dimension_numbers<[1], [1], [0], [0], [0, 0, 1, 0], [], []>} : vector<6x8xf32>, vector<16x8xf32>, vector<6x16xf32> -> vector<6x16xf32>
    "tpu.trace_stop"() : () -> ()
    %cst_75 = arith.constant dense<0xFF800000> : vector<6xf32>
    %170 = vector.multi_reduction <maximumf>, %169, %cst_75 [1] : vector<6x16xf32> to vector<6xf32>
    %171 = vector.shape_cast %170 : vector<6xf32> to vector<6x1xf32>
    %172 = vector.broadcast %171 : vector<6x1xf32> to vector<6x16xf32>
    %173 = arith.subf %169, %172 : vector<6x16xf32>
    %174 = math.exp %173 : vector<6x16xf32>
    %cst_76 = arith.constant dense<0.000000e+00> : vector<6xf32>
    %175 = vector.multi_reduction <add>, %174, %cst_76 [1] : vector<6x16xf32> to vector<6xf32>
    %176 = vector.shape_cast %175 : vector<6xf32> to vector<6x1xf32>
    %177 = vector.broadcast %176 : vector<6x1xf32> to vector<6x16xf32>
    %178 = arith.divf %174, %177 : vector<6x16xf32>
    %179 = arith.addf %161, %178 : vector<6x16xf32>
    %180 = arith.truncf %178 : vector<6x16xf32> to vector<6x16xbf16>
    %181 = vector.extract_strided_slice %130 {offsets = [0, 16], sizes = [16, 8], strides = [1, 1]} : vector<16x32xf32> to vector<16x8xf32>
    %182 = arith.truncf %181 : vector<16x8xf32> to vector<16x8xbf16>
    "tpu.trace_start"() <{level = 10 : i32, message = "qk,kd->qd"}> : () -> ()
    %cst_77 = arith.constant dense<0.000000e+00> : vector<6x8xf32>
    %183 = tpu.matmul %180, %182, %cst_77 {dimension_numbers = #tpu.dot_dimension_numbers<[1], [0], [0], [1], [0, 0, 1, 1], [], []>} : vector<6x16xbf16>, vector<16x8xbf16>, vector<6x8xf32> -> vector<6x8xf32>
    "tpu.trace_stop"() : () -> ()
    %c2_78 = arith.constant 2 : index
    %c16_79 = arith.constant 16 : index
    %184 = vector.load %arg24[%c2_78, %c16_79] : memref<8x32xf32, #tpu.memory_space<vmem>>, vector<6x8xf32>
    tpu.vector_store %arg24[%c2_78, %c16_79], %183 {strides = array<i32>} : memref<8x32xf32, #tpu.memory_space<vmem>>, vector<6x8xf32>,
    %185 = vector.extract_strided_slice %131 {offsets = [0, 24], sizes = [6, 8], strides = [1, 1]} : vector<6x32xf32> to vector<6x8xf32>
    %186 = vector.extract_strided_slice %124 {offsets = [0, 24], sizes = [16, 8], strides = [1, 1]} : vector<16x32xf32> to vector<16x8xf32>
    "tpu.trace_start"() <{level = 10 : i32, message = "qd,kd->qk"}> : () -> ()
    %cst_80 = arith.constant dense<0.000000e+00> : vector<6x16xf32>
    %187 = tpu.matmul %185, %186, %cst_80 {dimension_numbers = #tpu.dot_dimension_numbers<[1], [1], [0], [0], [0, 0, 1, 0], [], []>} : vector<6x8xf32>, vector<16x8xf32>, vector<6x16xf32> -> vector<6x16xf32>
    "tpu.trace_stop"() : () -> ()
    %cst_81 = arith.constant dense<0xFF800000> : vector<6xf32>
    %188 = vector.multi_reduction <maximumf>, %187, %cst_81 [1] : vector<6x16xf32> to vector<6xf32>
    %189 = vector.shape_cast %188 : vector<6xf32> to vector<6x1xf32>
    %190 = vector.broadcast %189 : vector<6x1xf32> to vector<6x16xf32>
    %191 = arith.subf %187, %190 : vector<6x16xf32>
    %192 = math.exp %191 : vector<6x16xf32>
    %cst_82 = arith.constant dense<0.000000e+00> : vector<6xf32>
    %193 = vector.multi_reduction <add>, %192, %cst_82 [1] : vector<6x16xf32> to vector<6xf32>
    %194 = vector.shape_cast %193 : vector<6xf32> to vector<6x1xf32>
    %195 = vector.broadcast %194 : vector<6x1xf32> to vector<6x16xf32>
    %196 = arith.divf %192, %195 : vector<6x16xf32>
    %197 = arith.addf %179, %196 : vector<6x16xf32>
    %198 = arith.truncf %196 : vector<6x16xf32> to vector<6x16xbf16>
    %199 = vector.extract_strided_slice %130 {offsets = [0, 24], sizes = [16, 8], strides = [1, 1]} : vector<16x32xf32> to vector<16x8xf32>
    %200 = arith.truncf %199 : vector<16x8xf32> to vector<16x8xbf16>
    "tpu.trace_start"() <{level = 10 : i32, message = "qk,kd->qd"}> : () -> ()
    %cst_83 = arith.constant dense<0.000000e+00> : vector<6x8xf32>
    %201 = tpu.matmul %198, %200, %cst_83 {dimension_numbers = #tpu.dot_dimension_numbers<[1], [0], [0], [1], [0, 0, 1, 1], [], []>} : vector<6x16xbf16>, vector<16x8xbf16>, vector<6x8xf32> -> vector<6x8xf32>
    "tpu.trace_stop"() : () -> ()
    %c2_84 = arith.constant 2 : index
    %c24_85 = arith.constant 24 : index
    %202 = vector.load %arg24[%c2_84, %c24_85] : memref<8x32xf32, #tpu.memory_space<vmem>>, vector<6x8xf32>
    tpu.vector_store %arg24[%c2_84, %c24_85], %201 {strides = array<i32>} : memref<8x32xf32, #tpu.memory_space<vmem>>, vector<6x8xf32>,
    %c0_86 = arith.constant 0 : index
    %c0_87 = arith.constant 0 : index
    %203 = vector.load %arg24[%c0_86, %c0_87] : memref<8x32xf32, #tpu.memory_space<vmem>>, vector<8x32xf32>
    %c0_88 = arith.constant 0 : index
    %c0_89 = arith.constant 0 : index
    %204 = vector.load %arg7[%c0_88, %c0_89] : memref<32x32xbf16, #tpu.memory_space<vmem>>, vector<32x32xbf16>
    %205 = arith.truncf %203 : vector<8x32xf32> to vector<8x32xbf16>
    %cst_90 = arith.constant dense<0.000000e+00> : vector<8x32xf32>
    %206 = tpu.matmul %205, %204, %cst_90 {dimension_numbers = #tpu.dot_dimension_numbers<[1], [0], [0], [1], [0, 0, 1, 1], [], []>} : vector<8x32xbf16>, vector<32x32xbf16>, vector<8x32xf32> -> vector<8x32xf32>
    %c0_91 = arith.constant 0 : index
    %c0_92 = arith.constant 0 : index
    %207 = vector.load %arg11[%c0_91, %c0_92] : memref<1x32xf32, #tpu.memory_space<vmem>>, vector<1x32xf32>
    %208 = vector.broadcast %207 : vector<1x32xf32> to vector<8x32xf32>
    %209 = arith.addf %206, %208 : vector<8x32xf32>
    %210 = arith.addf %25, %209 : vector<8x32xf32>
    %cst_93 = arith.constant dense<0.000000e+00> : vector<8xf32>
    %211 = vector.multi_reduction <add>, %210, %cst_93 [1] : vector<8x32xf32> to vector<8xf32>
    %212 = vector.shape_cast %211 : vector<8xf32> to vector<8x1xf32>
    %cst_94 = arith.constant 3.200000e+01 : f32
    %213 = vector.broadcast %cst_94 : f32 to vector<8x1xf32>
    %214 = arith.divf %212, %213 : vector<8x1xf32>
    %215 = vector.broadcast %214 : vector<8x1xf32> to vector<8x32xf32>
    %216 = arith.subf %210, %215 : vector<8x32xf32>
    %217 = arith.mulf %216, %216 : vector<8x32xf32>
    %cst_95 = arith.constant dense<0.000000e+00> : vector<8xf32>
    %218 = vector.multi_reduction <add>, %217, %cst_95 [1] : vector<8x32xf32> to vector<8xf32>
    %219 = vector.shape_cast %218 : vector<8xf32> to vector<8x1xf32>
    %cst_96 = arith.constant 3.200000e+01 : f32
    %220 = vector.broadcast %cst_96 : f32 to vector<8x1xf32>
    %221 = arith.divf %219, %220 : vector<8x1xf32>
    %222 = vector.broadcast %214 : vector<8x1xf32> to vector<8x32xf32>
    %223 = arith.subf %210, %222 : vector<8x32xf32>
    %cst_97 = arith.constant 9.99999974E-6 : f32
    %224 = vector.broadcast %cst_97 : f32 to vector<8x1xf32>
    %225 = arith.addf %221, %224 : vector<8x1xf32>
    %226 = math.rsqrt %225 : vector<8x1xf32>
    %227 = vector.broadcast %226 : vector<8x1xf32> to vector<8x32xf32>
    %228 = arith.mulf %223, %227 : vector<8x32xf32>
    %c0_98 = arith.constant 0 : index
    %c0_99 = arith.constant 0 : index
    %229 = vector.load %arg18[%c0_98, %c0_99] : memref<1x32xf32, #tpu.memory_space<vmem>>, vector<1x32xf32>
    %230 = vector.broadcast %229 : vector<1x32xf32> to vector<8x32xf32>
    %231 = arith.mulf %228, %230 : vector<8x32xf32>
    %c0_100 = arith.constant 0 : index
    %c0_101 = arith.constant 0 : index
    %232 = vector.load %arg19[%c0_100, %c0_101] : memref<1x32xf32, #tpu.memory_space<vmem>>, vector<1x32xf32>
    %233 = vector.broadcast %232 : vector<1x32xf32> to vector<8x32xf32>
    %234 = arith.addf %231, %233 : vector<8x32xf32>
    %c0_102 = arith.constant 0 : index
    %c0_103 = arith.constant 0 : index
    %235 = vector.load %arg12[%c0_102, %c0_103] : memref<32x64xbf16, #tpu.memory_space<vmem>>, vector<32x64xbf16>
    %236 = arith.truncf %234 : vector<8x32xf32> to vector<8x32xbf16>
    %cst_104 = arith.constant dense<0.000000e+00> : vector<8x64xf32>
    %237 = tpu.matmul %236, %235, %cst_104 {dimension_numbers = #tpu.dot_dimension_numbers<[1], [0], [0], [1], [0, 0, 1, 1], [], []>} : vector<8x32xbf16>, vector<32x64xbf16>, vector<8x64xf32> -> vector<8x64xf32>
    %c0_105 = arith.constant 0 : index
    %c0_106 = arith.constant 0 : index
    %238 = vector.load %arg13[%c0_105, %c0_106] : memref<1x64xf32, #tpu.memory_space<vmem>>, vector<1x64xf32>
    %239 = vector.broadcast %238 : vector<1x64xf32> to vector<8x64xf32>
    %240 = arith.addf %237, %239 : vector<8x64xf32>
    %cst_107 = arith.constant 0.000000e+00 : f32
    %241 = vector.broadcast %cst_107 : f32 to vector<8x64xf32>
    %242 = arith.maximumf %240, %241 : vector<8x64xf32>
    %c0_108 = arith.constant 0 : index
    %c0_109 = arith.constant 0 : index
    %243 = vector.load %arg14[%c0_108, %c0_109] : memref<64x32xbf16, #tpu.memory_space<vmem>>, vector<64x32xbf16>
    %244 = arith.truncf %242 : vector<8x64xf32> to vector<8x64xbf16>
    %cst_110 = arith.constant dense<0.000000e+00> : vector<8x32xf32>
    %245 = tpu.matmul %244, %243, %cst_110 {dimension_numbers = #tpu.dot_dimension_numbers<[1], [0], [0], [1], [0, 0, 1, 1], [], []>} : vector<8x64xbf16>, vector<64x32xbf16>, vector<8x32xf32> -> vector<8x32xf32>
    %c0_111 = arith.constant 0 : index
    %c0_112 = arith.constant 0 : index
    %246 = vector.load %arg15[%c0_111, %c0_112] : memref<1x32xf32, #tpu.memory_space<vmem>>, vector<1x32xf32>
    %247 = vector.broadcast %246 : vector<1x32xf32> to vector<8x32xf32>
    %248 = arith.addf %245, %247 : vector<8x32xf32>
    %249 = arith.addf %234, %248 : vector<8x32xf32>
    %cst_113 = arith.constant dense<0.000000e+00> : vector<8xf32>
    %250 = vector.multi_reduction <add>, %249, %cst_113 [1] : vector<8x32xf32> to vector<8xf32>
    %251 = vector.shape_cast %250 : vector<8xf32> to vector<8x1xf32>
    %cst_114 = arith.constant 3.200000e+01 : f32
    %252 = vector.broadcast %cst_114 : f32 to vector<8x1xf32>
    %253 = arith.divf %251, %252 : vector<8x1xf32>
    %254 = vector.broadcast %253 : vector<8x1xf32> to vector<8x32xf32>
    %255 = arith.subf %249, %254 : vector<8x32xf32>
    %256 = arith.mulf %255, %255 : vector<8x32xf32>
    %cst_115 = arith.constant dense<0.000000e+00> : vector<8xf32>
    %257 = vector.multi_reduction <add>, %256, %cst_115 [1] : vector<8x32xf32> to vector<8xf32>
    %258 = vector.shape_cast %257 : vector<8xf32> to vector<8x1xf32>
    %cst_116 = arith.constant 3.200000e+01 : f32
    %259 = vector.broadcast %cst_116 : f32 to vector<8x1xf32>
    %260 = arith.divf %258, %259 : vector<8x1xf32>
    %261 = vector.broadcast %253 : vector<8x1xf32> to vector<8x32xf32>
    %262 = arith.subf %249, %261 : vector<8x32xf32>
    %cst_117 = arith.constant 9.99999974E-6 : f32
    %263 = vector.broadcast %cst_117 : f32 to vector<8x1xf32>
    %264 = arith.addf %260, %263 : vector<8x1xf32>
    %265 = math.rsqrt %264 : vector<8x1xf32>
    %266 = vector.broadcast %265 : vector<8x1xf32> to vector<8x32xf32>
    %267 = arith.mulf %262, %266 : vector<8x32xf32>
    %c0_118 = arith.constant 0 : index
    %c0_119 = arith.constant 0 : index
    %268 = vector.load %arg20[%c0_118, %c0_119] : memref<1x32xf32, #tpu.memory_space<vmem>>, vector<1x32xf32>
    %269 = vector.broadcast %268 : vector<1x32xf32> to vector<8x32xf32>
    %270 = arith.mulf %267, %269 : vector<8x32xf32>
    %c0_120 = arith.constant 0 : index
    %c0_121 = arith.constant 0 : index
    %271 = vector.load %arg21[%c0_120, %c0_121] : memref<1x32xf32, #tpu.memory_space<vmem>>, vector<1x32xf32>
    %272 = vector.broadcast %271 : vector<1x32xf32> to vector<8x32xf32>
    %273 = arith.addf %270, %272 : vector<8x32xf32>
    %c0_122 = arith.constant 0 : index
    %c0_123 = arith.constant 0 : index
    %c0_124 = arith.constant 0 : index
    %274 = vector.load %arg22[%c0_122, %c0_123, %c0_124] : memref<1x8x32xf32, #tpu.memory_space<vmem>>, vector<1x8x32xf32>
    %275 = vector.shape_cast %274 : vector<1x8x32xf32> to vector<8x32xf32>
    %276 = vector.shape_cast %273 : vector<8x32xf32> to vector<1x8x32xf32>
    tpu.vector_store %arg22[%c0_122, %c0_123, %c0_124], %276 {strides = array<i32>} : memref<1x8x32xf32, #tpu.memory_space<vmem>>, vector<1x8x32xf32>,
    %cst_125 = arith.constant 2.500000e-01 : f32
    %277 = vector.broadcast %cst_125 : f32 to vector<6x16xf32>
    %278 = arith.mulf %197, %277 : vector<6x16xf32>
    %c0_126 = arith.constant 0 : index
    %c0_127 = arith.constant 0 : index
    %c0_128 = arith.constant 0 : index
    %279 = vector.load %arg23[%c0_126, %c0_127, %c0_128] : memref<1x6x16xf32, #tpu.memory_space<vmem>>, vector<1x6x16xf32>
    %280 = vector.shape_cast %279 : vector<1x6x16xf32> to vector<6x16xf32>
    %281 = vector.shape_cast %278 : vector<6x16xf32> to vector<1x6x16xf32>
    tpu.vector_store %arg23[%c0_126, %c0_127, %c0_128], %281 {strides = array<i32>} : memref<1x6x16xf32, #tpu.memory_space<vmem>>, vector<1x6x16xf32>,
    return
  }
  func.func @transform_0(%arg0: i32) -> (i32, i32, i32) {
    %c0_i32 = arith.constant 0 : i32
    %c0_i32_0 = arith.constant 0 : i32
    %c0_i32_1 = arith.constant 0 : i32
    return %arg0, %c0_i32, %c0_i32_0 : i32, i32, i32
  }
  func.func @transform_1(%arg0: i32) -> (i32, i32, i32) {
    %c0_i32 = arith.constant 0 : i32
    %c0_i32_0 = arith.constant 0 : i32
    %c0_i32_1 = arith.constant 0 : i32
    return %arg0, %c0_i32, %c0_i32_0 : i32, i32, i32
  }
  func.func @transform_2(%arg0: i32) -> (i32, i32, i32) {
    %c0_i32 = arith.constant 0 : i32
    %c0_i32_0 = arith.constant 0 : i32
    %c0_i32_1 = arith.constant 0 : i32
    return %arg0, %c0_i32, %c0_i32_0 : i32, i32, i32
  }
  func.func @transform_3(%arg0: i32) -> (i32, i32) {
    %c0_i32 = arith.constant 0 : i32
    %c0_i32_0 = arith.constant 0 : i32
    %c0_i32_1 = arith.constant 0 : i32
    return %c0_i32, %c0_i32_0 : i32, i32
  }
  func.func @transform_4(%arg0: i32) -> (i32, i32) {
    %c0_i32 = arith.constant 0 : i32
    %c0_i32_0 = arith.constant 0 : i32
    %c0_i32_1 = arith.constant 0 : i32
    return %c0_i32, %c0_i32_0 : i32, i32
  }
  func.func @transform_5(%arg0: i32) -> (i32, i32) {
    %c0_i32 = arith.constant 0 : i32
    %c0_i32_0 = arith.constant 0 : i32
    %c0_i32_1 = arith.constant 0 : i32
    return %c0_i32, %c0_i32_0 : i32, i32
  }
  func.func @transform_6(%arg0: i32) -> (i32, i32) {
    %c0_i32 = arith.constant 0 : i32
    %c0_i32_0 = arith.constant 0 : i32
    %c0_i32_1 = arith.constant 0 : i32
    return %c0_i32, %c0_i32_0 : i32, i32
  }
  func.func @transform_7(%arg0: i32) -> (i32, i32) {
    %c0_i32 = arith.constant 0 : i32
    %c0_i32_0 = arith.constant 0 : i32
    %c0_i32_1 = arith.constant 0 : i32
    return %c0_i32, %c0_i32_0 : i32, i32
  }
  func.func @transform_8(%arg0: i32) -> (i32, i32) {
    %c0_i32 = arith.constant 0 : i32
    %c0_i32_0 = arith.constant 0 : i32
    %c0_i32_1 = arith.constant 0 : i32
    return %c0_i32, %c0_i32_0 : i32, i32
  }
  func.func @transform_9(%arg0: i32) -> (i32, i32) {
    %c0_i32 = arith.constant 0 : i32
    %c0_i32_0 = arith.constant 0 : i32
    %c0_i32_1 = arith.constant 0 : i32
    return %c0_i32, %c0_i32_0 : i32, i32
  }
  func.func @transform_10(%arg0: i32) -> (i32, i32) {
    %c0_i32 = arith.constant 0 : i32
    %c0_i32_0 = arith.constant 0 : i32
    %c0_i32_1 = arith.constant 0 : i32
    return %c0_i32, %c0_i32_0 : i32, i32
  }
  func.func @transform_11(%arg0: i32) -> (i32, i32) {
    %c0_i32 = arith.constant 0 : i32
    %c0_i32_0 = arith.constant 0 : i32
    %c0_i32_1 = arith.constant 0 : i32
    return %c0_i32, %c0_i32_0 : i32, i32
  }
  func.func @transform_12(%arg0: i32) -> (i32, i32) {
    %c0_i32 = arith.constant 0 : i32
    %c0_i32_0 = arith.constant 0 : i32
    %c0_i32_1 = arith.constant 0 : i32
    return %c0_i32, %c0_i32_0 : i32, i32
  }
  func.func @transform_13(%arg0: i32) -> (i32, i32) {
    %c0_i32 = arith.constant 0 : i32
    %c0_i32_0 = arith.constant 0 : i32
    %c0_i32_1 = arith.constant 0 : i32
    return %c0_i32, %c0_i32_0 : i32, i32
  }
  func.func @transform_14(%arg0: i32) -> (i32, i32) {
    %c0_i32 = arith.constant 0 : i32
    %c0_i32_0 = arith.constant 0 : i32
    %c0_i32_1 = arith.constant 0 : i32
    return %c0_i32, %c0_i32_0 : i32, i32
  }
  func.func @transform_15(%arg0: i32) -> (i32, i32) {
    %c0_i32 = arith.constant 0 : i32
    %c0_i32_0 = arith.constant 0 : i32
    %c0_i32_1 = arith.constant 0 : i32
    return %c0_i32, %c0_i32_0 : i32, i32
  }
  func.func @transform_16(%arg0: i32) -> (i32, i32) {
    %c0_i32 = arith.constant 0 : i32
    %c0_i32_0 = arith.constant 0 : i32
    %c0_i32_1 = arith.constant 0 : i32
    return %c0_i32, %c0_i32_0 : i32, i32
  }
  func.func @transform_17(%arg0: i32) -> (i32, i32) {
    %c0_i32 = arith.constant 0 : i32
    %c0_i32_0 = arith.constant 0 : i32
    %c0_i32_1 = arith.constant 0 : i32
    return %c0_i32, %c0_i32_0 : i32, i32
  }
  func.func @transform_18(%arg0: i32) -> (i32, i32) {
    %c0_i32 = arith.constant 0 : i32
    %c0_i32_0 = arith.constant 0 : i32
    %c0_i32_1 = arith.constant 0 : i32
    return %c0_i32, %c0_i32_0 : i32, i32
  }
  func.func @transform_19(%arg0: i32) -> (i32, i32) {
    %c0_i32 = arith.constant 0 : i32
    %c0_i32_0 = arith.constant 0 : i32
    %c0_i32_1 = arith.constant 0 : i32
    return %c0_i32, %c0_i32_0 : i32, i32
  }
  func.func @transform_20(%arg0: i32) -> (i32, i32) {
    %c0_i32 = arith.constant 0 : i32
    %c0_i32_0 = arith.constant 0 : i32
    %c0_i32_1 = arith.constant 0 : i32
    return %c0_i32, %c0_i32_0 : i32, i32
  }
  func.func @transform_21(%arg0: i32) -> (i32, i32, i32) {
    %c0_i32 = arith.constant 0 : i32
    %c0_i32_0 = arith.constant 0 : i32
    %c0_i32_1 = arith.constant 0 : i32
    return %arg0, %c0_i32, %c0_i32_0 : i32, i32, i32
  }
  func.func @transform_22(%arg0: i32) -> (i32, i32, i32) {
    %c0_i32 = arith.constant 0 : i32
    %c0_i32_0 = arith.constant 0 : i32
    %c0_i32_1 = arith.constant 0 : i32
    return %arg0, %c0_i32, %c0_i32_0 : i32, i32, i32
  }
}

</mosaic_0001>

<bundles_post_ra>
// kernel: multi_transformer_decoder_layer_forward.1
= control target key start
LH: loop header
LB: loop body
LE: loop exit
PB: predicated region body
PF: predicated region fallthrough
CT: control target
= control target key end

     0   :  { %s3541_s0 = inlined_call_operand.vmem [shape: f32[2,8,32], index: 0, kind: input, shape index: {}]   ;;  %s3542_s1 = inlined_call_operand.vmem [shape: f32[2,4,32], index: 1, kind: input, shape index: {}]   ;;  %s3543_s2 = inlined_call_operand.vmem [shape: f32[2,16,32], index: 2, kind: input, shape index: {}]   ;;  %s3544_s3 = inlined_call_operand.vmem [shape: bf16[32,32], index: 3, kind: input, shape index: {}]   ;;  %s3545_s4 = inlined_call_operand.vmem [shape: bf16[32,32], index: 4, kind: input, shape index: {}]   ;;  %s3546_s5 = inlined_call_operand.vmem [shape: bf16[32,32], index: 5, kind: input, shape index: {}]   ;;  %s3547_s6 = inlined_call_operand.vmem [shape: bf16[32,32], index: 6, kind: input, shape index: {}]   ;;  %s3548_s7 = inlined_call_operand.vmem [shape: f32[1,32], index: 7, kind: input, shape index: {}]   ;;  %s3549_s8 = inlined_call_operand.vmem [shape: f32[1,32], index: 8, kind: input, shape index: {}]   ;;  %s3550_s9 = inlined_call_operand.vmem [shape: f32[1,32], index: 9, kind: input, shape index: {}]   ;;  %s3551_s10 = inlined_call_operand.vmem [shape: f32[1,32], index: 10, kind: input, shape index: {}]   ;;  %s3552_s11 = inlined_call_operand.vmem [shape: bf16[32,64], index: 11, kind: input, shape index: {}]   ;;  %s3553_s12 = inlined_call_operand.vmem [shape: f32[1,64], index: 12, kind: input, shape index: {}]   ;;  %s3554_s13 = inlined_call_operand.vmem [shape: bf16[64,32], index: 13, kind: input, shape index: {}]   ;;  %s3555_s14 = inlined_call_operand.vmem [shape: f32[1,32], index: 14, kind: input, shape index: {}]   ;;  %s3556_s15 = inlined_call_operand.vmem [shape: f32[1,32], index: 15, kind: input, shape index: {}]   ;;  %s3557_s16 = inlined_call_operand.vmem [shape: f32[1,32], index: 16, kind: input, shape index: {}]   ;;  %s3558_s17 = inlined_call_operand.vmem [shape: f32[1,32], index: 17, kind: input, shape index: {}]   ;;  %s3559_s18 = inlined_call_operand.vmem [shape: f32[1,32], index: 18, kind: input, shape index: {}]   ;;  %s3560_s19 = inlined_call_operand.vmem [shape: f32[1,32], index: 19, kind: input, shape index: {}]   ;;  %s3561_s20 = inlined_call_operand.vmem [shape: f32[1,32], index: 20, kind: input, shape index: {}]   ;;  %s3562_s21 = inlined_call_operand.vmem [shape: f32[2,8,32], index: 21, kind: output, shape index: {0}]   ;;  %s3563_s22 = inlined_call_operand.vmem [shape: f32[2,6,16], index: 22, kind: output, shape index: {1}]  }
   0x1   :  { %3574 = sst [smem:[#allocation3_spill]] %s3541_s0 }
   0x2   :  { %3575 = sst [smem:[#allocation4_spill]] %s3542_s1 }
   0x3   :  { %3576 = sst [smem:[#allocation5_spill]] %s3543_s2 }
   0x4   :  { %3577 = sst [smem:[#allocation6_spill]] %s3544_s3  ;;  %s3183_s3 = smov 0  }
   0x5   :  { %3578 = sst [smem:[#allocation7_spill]] %s3545_s4 }
   0x6   :  { %3579 = sst [smem:[#allocation8_spill]] %s3546_s5 }
   0x7   :  { %3580 = sst [smem:[#allocation9_spill]] %s3547_s6 }
   0x8 LB: > { %s2639_s28 = sadd.s32 4294967295, %s3057_s3   ;;  %p2643_p0 = scmp.ge.s32.totalorder %s3057_s3, 1  ;;  %s3057_s3 = sphi %s3183_s3, %s33_s3  }
   0x9   : > { %p633_p1 = scmp.lt.s32.totalorder %s3057_s3, 3 }
   0xb   : > { %p634_p2 = pnand %p2643_p0, %p633_p1 }
   0xc   : > { %p706_p3 = scmp.lt.s32.totalorder (!%p634_p2), %s2639_s28, 1  ;;  %vm729_vm0 = vcmask (!%p634_p2), 261120   ;;  %s3581_s0 = sld [smem:[#allocation3_spill]] (!%p634_p2)  ;;  %v3059_v8 = vmov (!%p634_p2), 0.0   ;;  %vm3060_vm1 = vmmov (!%p634_p2), 0   ;;  %vm959_vm2 = vcmask (!%p634_p2), 64512  }
   0xd   : > { %637 = sbr.rel (%p634_p2) target bundleno = 4651 (0x122b), region = 104  ;;  %s3582_s24 = sld [smem:[#allocation7_spill]] (!%p634_p2)  ;;  %2791 = vmatprep.subr.bf16.mxu1 (!%p634_p2), %v3059_v8  ;;  %2783 = vmatprep.subr.bf16.mxu0 (!%p634_p2), %v3059_v8  ;;  %v2650_v18 = vld [vmem:[%s3556_s15] ss:$0 sm:$0xff] (!%p634_p2)  ;;  %vm1054_vm3 = vcmask (!%p634_p2), 1041408   ;;  %vm1036_vm4 = vcmask (!%p634_p2), 25600   ;;  %vm3378_vm7 = vmpackc.low (!%p634_p2), %vm959_vm2, %vm959_vm2 }
   0xe   : > { %s3583_s30 = sld [smem:[#allocation6_spill]] (!%p634_p2)  ;;  %2795 = vmatprep.mubr.msk.bf16.mxu1 (!%p634_p2), %vm3060_vm1, %v3059_v8  ;;  %2787 = vmatprep.mubr.msk.bf16.mxu0 (!%p634_p2), %vm3060_vm1, %v3059_v8  ;;  %v2651_v20 = vld [vmem:[%s3557_s16] ss:$0 sm:$0xff] (!%p634_p2)  ;;  %s3572_s5 = smov (!%p634_p2), 104   ;;  %vm1050_vm5 = vcmask (!%p634_p2), 31744   ;;  %vm1098_vm6 = vcmask (!%p634_p2), 58368  }
   0xf   : > { %v3258_v26 = vld [vmem:[%s3549_s8] ss:$0 sm:$0xff] (!%p634_p2)  ;;  %s3590_s25 = smov (!%p634_p2), 120   ;;  %vm1746_vm8 = vcmask (!%p634_p2), 128000   ;;  %s3591_s2 = smov (!%p634_p2), 112   ;;  %vm1760_vm9 = vcmask (!%p634_p2), 130048  }
  0x10   : > { %v2652_v32 = vld [vmem:[%s3548_s7] ss:$0 sm:$0xff] (!%p634_p2)  ;;  %vm1804_vm10 = vcmask (!%p634_p2), 62464   ;;  %s3065_s27 = smov (!%p634_p2), 8   ;;  %s3066_s4 = smov (!%p634_p2), 16   ;;  %vm1952_vm11 = vcmask (!%p634_p2), 128064  }
  0x11   : > { %v3279_v40 = vld [vmem:[%s3550_s9] ss:$0 sm:$0xff] (!%p634_p2)  ;;  %vm1243_vm12 = vcmask (!%p634_p2), 123968   ;;  %vm1387_vm13 = vcmask (!%p634_p2), 189568   ;;  %vm1531_vm14 = vcmask (!%p634_p2), 255168   ;;  %vm2099_vm15 = vcmask (!%p634_p2), 193664  }
  0x13   : > { %v2995_v7 = vld [vmem:[%s3582_s24] sm:$0xff] (!%p634_p2)   ;;  %v2996_v9 = vld [vmem:[%s3582_s24 + $0x8] sm:$0xff] (!%p634_p2)  }
  0x14   : > { %s3594_s28 = smov (!%p706_p3, %s2639_s28), 1  ;;  %2792 = vmatpush3.bf16.msra.mxu1 %v2995_v7  ;;  %v2997_v10 = vld [vmem:[%s3583_s30] sm:$0xff]   ;;  %v2998_v13 = vld [vmem:[%s3583_s30 + $0x8] sm:$0xff]  }
  0x15   : > { %s3194_s29 = sshll.u32 %s3594_s28, 3  ;;  %2793 = vmatprep.subr.bf16.mxu1 %v3059_v8  ;;  %s2645_s26 = sshll.u32 %s3594_s28, 2  ;;  %2784 = vmatpush3.bf16.msra.mxu0 %v2997_v10 }
  0x16   : > { %s709_s23 = scalar_lea.vmem %s3581_s0, %s3194_s29  ;;  %2785 = vmatprep.subr.bf16.mxu0 %v3059_v8  ;;  %s2720_s6 = sshll.u32 %s3594_s28, 4 }
  0x17   : > { %v728_v0 = vld [vmem:[%s709_s23] sm:$0xff]  ;;  %s3584_s23 = sld [smem:[#allocation4_spill]]  ;;  %s3586_s0 = sld [smem:[#allocation5_spill]] }
  0x18   : > { %v730_v1 = vsel %vm729_vm0, %v728_v0, 0.0  ;;  %2794 = vmatpush3.bf16.msra.mxu1 %v2996_v9  ;;  %s3587_s28 = smov 104  }
  0x19   : > { %731 = vadd.xlane.f32.xlu0 %v730_v1  ;;  %2812 = vmatprep.subr.bf16.mxu1 %v3059_v8 }
  0x1a   : > { %2786 = vmatpush3.bf16.msra.mxu0 %v2998_v13 }
  0x1b   : > { %2799 = vmatprep.subr.bf16.mxu0 %v3059_v8 }
  0x1d   : > { %s713_s1 = scalar_lea.vmem %s3584_s23, %s2645_s26  ;;  %s3585_s23 = sld [smem:[#allocation8_spill]] }
  0x1e   : > { %v828_v11 = vld [vmem:[%s713_s1] sm:$0xf]  ;;  %s3570_s26 = smov 120   ;;  %s3568_s1 = smov 112  }
  0x1f   : > { %v833_v12 = vpack.c.bf16 %v828_v11, %v828_v11 }
  0x21   : > { %2796 = vmatmul.mubr.msk.bf16.vlgmr.msra.gmra.mrb[0].mxu1 %vm729_vm0, %v833_v12 }
  0x22   : > { %2814 = vmatprep.mubr.msk.bf16.mxu1 %vm3060_vm1, %v3059_v8 }
  0x23   : > { %v2999_v23 = vld [vmem:[%s3585_s23] sm:$0xff]   ;;  %v3000_v25 = vld [vmem:[%s3585_s23 + $0x8] sm:$0xff]  }
  0xa6   : > { %v732_v2 = vpop.xlane.xlu0 %731 }
  0xa7   : > { %v734_v3 = vmul.f32 0.03125, %v732_v2 }
  0xa9   : > { %v735_v4 = vsub.f32 %v728_v0, %v734_v3 }
  0xab   : > { %v736_v5 = vmul.f32 %v735_v4, %v735_v4 }
  0xad   : > { %v737_v6 = vsel %vm729_vm0, %v736_v5, 0.0 }
  0xae   : > { %738 = vadd.xlane.f32.xlu0 %v737_v6 }
  0xf4   : > { %v890_v27 = vpop.f32.mrb[0].mxu1 }
  0xf5   : > { %v891_v28 = vadd.f32 %v3258_v26, %v890_v27  ;;  %v2797_v29 = vpop.f32.mrb[1].mxu1 }
  0xf6   : > { %v893_v30 = vpop.f32.mrb[2].mxu1 }
  0xf7   : > { %v2798_v31 = vpop.f32.mrb[3].mxu1  ;;  %1102 = vrot.lane.b32.xlu1 %v891_v28, %s3570_s26 }
 0x13b   : > { %v739_v14 = vpop.xlane.xlu0 %738 }
 0x13c   : > { %v740_v15 = vmul.f32 0.03125, %v739_v14 }
 0x13e   : > { %v741_v16 = vadd.f32 1e-05, %v740_v15 }
 0x140   : > { %3013 = vrsqrt.f32 %v741_v16 }
 0x14a   : > { %v3014_v17 = vpop.eup %3013 }
 0x14b   : > { %v743_v19 = vmul.f32 %v3014_v17, %v735_v4 }
 0x14d   : > { %v751_v21 = vmul.f32 %v2650_v18, %v743_v19 }
 0x14f   : > { %v3237_v22 = vadd.f32 %v2651_v20, %v751_v21 }
 0x151   : > { %v764_v24 = vpack.c.bf16 %v3237_v22, %v3237_v22 }
 0x153   : > { %2788 = vmatmul.mubr.msk.bf16.vlgmr.msra.gmra.mrb[0].mxu0 %vm729_vm0, %v764_v24 }
 0x154   : > { %2800 = vmatpush3.bf16.msra.mxu0 %v2999_v23  ;;  %2803 = vmatprep.mubr.msk.bf16.mxu0 %vm3060_vm1, %v3059_v8 }
 0x155   : > { %2801 = vmatprep.subr.bf16.mxu0 %v3059_v8 }
 0x158   : > { %2802 = vmatpush3.bf16.msra.mxu0 %v3000_v25 }
 0x159   : > { %2807 = vmatprep.subr.mxu0 %v3059_v8 }
 0x15b   : > { %2804 = vmatmul.mubr.msk.bf16.vlgmr.msra.gmra.mrb[4].mxu0 %vm729_vm0, %v833_v12 }
 0x15c   : > { %2809 = vmatprep.mubr.msk.f32.mxu0 %vm3060_vm1, %v3059_v8 }
 0x161   : > { %2808 = vmatpush3.xpose.msk.msra.mxu0 %vm959_vm2, %v891_v28 }
 0x162   : > { %2818 = vmatprep.subr.mxu0 %v3059_v8 }
 0x169   : > { %v1103_v39 = vpop.permute.xlu1 %1102 }
 0x226   : > { %v821_v33 = vpop.f32.mrb[0].mxu0 }
 0x227   : > { %v822_v34 = vadd.f32 %v2652_v32, %v821_v33  ;;  %v2789_v35 = vpop.f32.mrb[1].mxu0 }
 0x228   : > { %v824_v36 = vpop.f32.mrb[2].mxu0 }
 0x229   : > { %v3267_v37 = vmul.f32 0.35355338, %v822_v34  ;;  %v2790_v38 = vpop.f32.mrb[3].mxu0 }
 0x22b   : > { %1100 = vrot.lane.b32.xlu0 %v3267_v37, %s3570_s26  ;;  %2810 = vmatmul.mubr.msk.f32.vlgmr.msra.gmra.mrb[8].mxu0 %vm959_vm2, %v3267_v37 }
 0x22c   : > { %2819 = vmatpush3.xpose.msk.msra.mxu0 %vm959_vm2, %v1103_v39  ;;  %2820 = vmatprep.mubr.msk.f32.mxu0 %vm3060_vm1, %v3059_v8 }
 0x22d   : > { %2823 = vmatprep.subr.bf16.mxu0 %v3059_v8 }
 0x22e   : > { %v953_v41 = vpop.f32.mrb[4].mxu0 }
 0x22f   : > { %v954_v42 = vadd.f32 %v3279_v40, %v953_v41  ;;  %v2805_v43 = vpop.f32.mrb[5].mxu0  ;;  %v3331_v41 = vrot.slane %v3267_v37, 2 }
 0x230   : > { %v956_v44 = vpop.f32.mrb[6].mxu0 }
 0x231   : > { %v3283_v45 = vpack.c.bf16 %v954_v42, %v954_v42  ;;  %v2806_v46 = vpop.f32.mrb[7].mxu0 }
 0x233   : > { %v1056_v47 = vsel %vm1054_vm3, %v3283_v45, 0 }
 0x234   : > { %2813 = vmatpush3.bf16.msra.mxu1 %v1056_v47 }
 0x235   : > { %2829 = vmatprep.subr.mxu1 %v3059_v8 }
 0x29d   : > { %v1101_v48 = vpop.permute.xlu0 %1100 }
 0x29e   : > { %2821 = vmatmul.mubr.msk.f32.vlgmr.msra.gmra.mrb[10].mxu0 %vm959_vm2, %v1101_v48 }
 0x29f   : > { %2825 = vmatprep.mubr.msk.bf16.mxu0 %vm3060_vm1, %v3059_v8 }
 0x2fe   : > { %v1032_v49 = vpop.f32.mrb[8].mxu0 }
 0x2ff   : > { %v2811_v50 = vpop.f32.mrb[9].mxu0  ;;  %v1037_v51 = vsel %vm1036_vm4, %v1032_v49, -inf }
 0x300   : > { %1038 = vmax.xlane.f32.xlu1 %v1037_v51  ;;  %v3002_v50 = vld [vmem:[%s3582_s24 + $0x8] sm:$0xff]  }
 0x311   : > { %1247 = vrot.lane.b32.xlu1 %v891_v28, %s3568_s1 }
 0x315   : > { %1245 = vrot.lane.b32.xlu1 %v3267_v37, %s3568_s1 }
 0x371   : > { %v1174_v52 = vpop.f32.mrb[10].mxu0 }
 0x372   : > { %v2822_v53 = vpop.f32.mrb[11].mxu0  ;;  %v1178_v59 = vsel %vm1036_vm4, %v1174_v52, -inf }
 0x38d   : > { %v1039_v54 = vpop.xlane.xlu1 %1038 }
 0x38e   : > { %v1040_v55 = vsub.f32 %v1032_v49, %v1039_v54  ;;  %v3001_v49 = vld [vmem:[%s3582_s24] sm:$0xff]  }
 0x390   : > { %v1041_v56 = vmul.f32 1.442695, %v1040_v55 }
 0x391   : > { %v1248_v5 = vpop.permute.xlu1 %1247 }
 0x392   : > { %3015 = vpow2.f32 %v1041_v56  ;;  %v3064_v56 = vmov 0.0|0.0  }
 0x395   : > { %v1246_v9 = vpop.permute.xlu1 %1245 }
 0x39c   : > { %v3016_v57 = vpop.eup %3015 }
 0x39d   : > { %v1043_v58 = vsel %vm1036_vm4, %v3016_v57, 0.0 }
 0x39e   : > { %1044 = vadd.xlane.f32.xlu0 %v1043_v58 }
 0x3a2   : > { %1179 = vmax.xlane.f32.xlu0 %v1178_v59 }
 0x3b8   : > { %1191 = vrot.lane.b32.xlu0 %v3283_v45, %s3570_s26 }
 0x3bc   : > { %1391 = vrot.lane.b32.xlu0 %v891_v28, %s3572_s5 }
 0x42b   : > { %v1045_v60 = vpop.xlane.xlu0 %1044 }
 0x42c   : > { %3017 = vrcp.f32 %v1045_v60 }
 0x42f   : > { %v1180_v61 = vpop.xlane.xlu0 %1179 }
 0x430   : > { %v1181_v62 = vsub.f32 %v1174_v52, %v1180_v61 }
 0x432   : > { %v1182_v63 = vmul.f32 1.442695, %v1181_v62  ;;  %v3003_v62 = vld [vmem:[%s3585_s23] sm:$0xff]  }
 0x433   : > { %v1192_v0 = vpop.permute.xlu0 %1191 }
 0x434   : > { %3019 = vpow2.f32 %v1182_v63  ;;  %v1197_v1 = vsel %vm1054_vm3, %v1192_v0, 0 }
 0x435   : > { %2824 = vmatpush3.bf16.msra.mxu0 %v1197_v1 }
 0x436   : > { %v3018_v2 = vpop.eup %3017  ;;  %2840 = vmatprep.subr.mxu0 %v3059_v8 }
 0x437   : > { %v1047_v3 = vmul.f32 %v3018_v2, %v3016_v57  ;;  %v1392_v14 = vpop.permute.xlu0 %1391 }
 0x439   : > { %v1048_v4 = vpack.c.bf16 %v1047_v3, %v1047_v3 }
 0x43b   : > { %2815 = vmatmul.mubr.msk.bf16.vlgmr.msra.gmra.mrb[4].mxu1 %vm1050_vm5, %v1048_v4 }
 0x43c   : > { %2830 = vmatpush3.xpose.msk.msra.mxu1 %vm959_vm2, %v1248_v5  ;;  %2831 = vmatprep.mubr.msk.f32.mxu1 %vm3060_vm1, %v3059_v8 }
 0x43d   : > { %2834 = vmatprep.subr.bf16.mxu1 %v3059_v8 }
 0x43e   : > { %v3020_v6 = vpop.eup %3019 }
 0x43f   : > { %v1184_v7 = vsel %vm1036_vm4, %v3020_v6, 0.0 }
 0x440   : > { %1185 = vadd.xlane.f32.xlu1 %v1184_v7 }
 0x443   : > { %2832 = vmatmul.mubr.msk.f32.vlgmr.msra.gmra.mrb[8].mxu1 %vm959_vm2, %v1246_v9 }
 0x444   : > { %2836 = vmatprep.mubr.msk.bf16.mxu1 %vm3060_vm1, %v3059_v8 }
 0x451   : > { %1389 = vrot.lane.b32.xlu1 %v3267_v37, %s3572_s5 }
 0x4cd   : > { %v1186_v10 = vpop.xlane.xlu1 %1185 }
 0x4ce   : > { %3021 = vrcp.f32 %v1186_v10 }
 0x4d1   : > { %v1390_v15 = vpop.permute.xlu1 %1389 }
 0x4d8   : > { %v3022_v11 = vpop.eup %3021 }
 0x4d9   : > { %v1188_v12 = vmul.f32 %v3022_v11, %v3020_v6 }
 0x4db   : > { %v1189_v13 = vpack.c.bf16 %v1188_v12, %v1188_v12 }
 0x4dd   : > { %2826 = vmatmul.mubr.msk.bf16.vlgmr.msra.gmra.mrb[12].mxu0 %vm1050_vm5, %v1189_v13 }
 0x4de   : > { %2841 = vmatpush3.xpose.msk.msra.mxu0 %vm959_vm2, %v1392_v14  ;;  %2842 = vmatprep.mubr.msk.f32.mxu0 %vm3060_vm1, %v3059_v8 }
 0x4df   : > { %2845 = vmatprep.subr.bf16.mxu0 %v3059_v8 }
 0x4e5   : > { %2843 = vmatmul.mubr.msk.f32.vlgmr.msra.gmra.mrb[16].mxu0 %vm959_vm2, %v1390_v15 }
 0x4e6   : > { %2847 = vmatprep.mubr.msk.bf16.mxu0 %vm3060_vm1, %v3059_v8 }
 0x50e   : > { %v1092_v16 = vpop.f32.mrb[4].mxu1 }
 0x50f   : > { %1099 = vst.msk [vmem:[#allocation2] sm:$0x3] %vm1098_vm6, %v1092_v16  ;;  %v2816_v17 = vpop.f32.mrb[5].mxu1 }
 0x510   : > { %v1095_v18 = vpop.f32.mrb[6].mxu1 }
 0x511   : > { %v2817_v19 = vpop.f32.mrb[7].mxu1 }
 0x516   : > { %v1319_v20 = vpop.f32.mrb[8].mxu1 }
 0x517   : > { %v2833_v21 = vpop.f32.mrb[9].mxu1  ;;  %v1323_v23 = vsel %vm1036_vm4, %v1319_v20, -inf }
 0x518   : > { %1324 = vmax.xlane.f32.xlu0 %v1323_v23 }
 0x52e   : > { %1335 = vrot.lane.b32.xlu0 %v3283_v45, %s3568_s1  ;;  %s718_s1 = scalar_lea.vmem %s3586_s0, %s2720_s6  ;;  %s3067_s0 = smov 24  }
 0x52f   : > { %v1533_v51 = vld [vmem:[%s718_s1] sm:$0xff]  ;;  %v1534_v52 = vld [vmem:[%s718_s1 + $0x8] sm:$0xff]  ;;  %s726_s1 = scalar_lea.vmem %s3563_s22, %s3194_s29 }
 0x530   : > { %v1539_v55 = vpack.c.bf16 %v1534_v52, %v1533_v51 }
 0x5a5   : > { %v1325_v24 = vpop.xlane.xlu0 %1324 }
 0x5a6   : > { %v1326_v25 = vsub.f32 %v1319_v20, %v1325_v24 }
 0x5a8   : > { %v1327_v27 = vmul.f32 1.442695, %v1326_v25 }
 0x5a9   : > { %v1336_v28 = vpop.permute.xlu0 %1335 }
 0x5aa   : > { %3023 = vpow2.f32 %v1327_v27  ;;  %v1341_v29 = vsel %vm1054_vm3, %v1336_v28, 0 }
 0x5ab   : > { %2835 = vmatpush3.bf16.msra.mxu1 %v1341_v29 }
 0x5ac   : > { %2851 = vmatprep.subr.bf16.mxu1 %v3059_v8 }
 0x5b0   : > { %v3326_v30 = vpop.f32.mrb[12].mxu0 }
 0x5b1   : > { %v2827_v31 = vpop.f32.mrb[13].mxu0 }
 0x5b2   : > { %v1236_v32 = vpop.f32.mrb[14].mxu0 }
 0x5b3   : > { %v2828_v33 = vpop.f32.mrb[15].mxu0 }
 0x5b4   : > { %v3024_v34 = vpop.eup %3023 }
 0x5b5   : > { %v1329_v35 = vsel %vm1036_vm4, %v3024_v34, 0.0 }
 0x5b6   : > { %1330 = vadd.xlane.f32.xlu1 %v1329_v35 }
 0x5b8   : > { %v1463_v36 = vpop.f32.mrb[16].mxu0 }
 0x5b9   : > { %v2844_v38 = vpop.f32.mrb[17].mxu0  ;;  %v1467_v39 = vsel %vm1036_vm4, %v1463_v36, -inf }
 0x5ba   : > { %1468 = vmax.xlane.f32.xlu0 %v1467_v39 }
 0x5d0   : > { %1806 = vrot.lane.b32.xlu0 %v3331_v41, %s3570_s26 }
 0x643   : > { %v1331_v42 = vpop.xlane.xlu1 %1330 }
 0x644   : > { %3025 = vrcp.f32 %v1331_v42 }
 0x647   : > { %v1469_v43 = vpop.xlane.xlu0 %1468 }
 0x648   : > { %v1470_v44 = vsub.f32 %v1463_v36, %v1469_v43 }
 0x64a   : > { %v1471_v46 = vmul.f32 1.442695, %v1470_v44 }
 0x64b   : > { %v1807_v17 = vpop.permute.xlu0 %1806 }
 0x64c   : > { %3027 = vpow2.f32 %v1471_v46 }
 0x64e   : > { %v3026_v47 = vpop.eup %3025 }
 0x64f   : > { %v1333_v48 = vmul.f32 %v3026_v47, %v3024_v34 }
 0x651   : > { %v1334_v37 = vpack.c.bf16 %v1333_v48, %v1333_v48 }
 0x653   : > { %2837 = vmatmul.mubr.msk.bf16.vlgmr.msra.gmra.mrb[12].mxu1 %vm1050_vm5, %v1334_v37 }
 0x654   : > { %2852 = vmatpush3.bf16.msra.mxu1 %v3001_v49  ;;  %2855 = vmatprep.mubr.msk.bf16.mxu1 %vm3060_vm1, %v3059_v8 }
 0x655   : > { %2853 = vmatprep.subr.bf16.mxu1 %v3059_v8 }
 0x656   : > { %v3028_v53 = vpop.eup %3027 }
 0x657   : > { %v1473_v54 = vsel %vm1036_vm4, %v3028_v53, 0.0 }
 0x658   : > { %2854 = vmatpush3.bf16.msra.mxu1 %v3002_v50  ;;  %1474 = vadd.xlane.f32.xlu1 %v1473_v54 }
 0x659   : > { %2947 = vmatprep.subr.bf16.mxu1 %v3064_v56 }
 0x65b   : > { %2856 = vmatmul.mubr.msk.bf16.vlgmr.msra.gmra.mrb[16].mxu1 %vm729_vm0, %v1539_v55 }
 0x65c   : > { %2871 = vmatprep.mubr.msk.f32.mxu1 %vm3060_vm1, %v3059_v8 }
 0x669   : > { %1479 = vrot.lane.b32.xlu1 %v3283_v45, %s3587_s28  ;;  %v3004_v45 = vld [vmem:[%s3585_s23 + $0x8] sm:$0xff]  }
 0x6e5   : > { %v1475_v57 = vpop.xlane.xlu1 %1474 }
 0x6e6   : > { %3029 = vrcp.f32 %v1475_v57 }
 0x6e9   : > { %v1480_v58 = vpop.permute.xlu1 %1479 }
 0x6ea   : > { %v1485_v59 = vsel %vm1054_vm3, %v1480_v58, 0 }
 0x6eb   : > { %2846 = vmatpush3.bf16.msra.mxu0 %v1485_v59 }
 0x6ec   : > { %2859 = vmatprep.subr.bf16.mxu0 %v3059_v8 }
 0x6f0   : > { %v3030_v60 = vpop.eup %3029 }
 0x6f1   : > { %v1477_v61 = vmul.f32 %v3030_v60, %v3028_v53 }
 0x6f3   : > { %v1478_v63 = vpack.c.bf16 %v1477_v61, %v1477_v61 }
 0x6f5   : > { %2848 = vmatmul.mubr.msk.bf16.vlgmr.msra.gmra.mrb[20].mxu0 %vm1050_vm5, %v1478_v63 }
 0x6f6   : > { %2860 = vmatpush3.bf16.msra.mxu0 %v3003_v62  ;;  %2863 = vmatprep.mubr.msk.bf16.mxu0 %vm3060_vm1, %v3059_v8 }
 0x6f7   : > { %2861 = vmatprep.subr.bf16.mxu0 %v3059_v8 }
 0x6fa   : > { %2862 = vmatpush3.bf16.msra.mxu0 %v3004_v45 }
 0x6fb   : > { %2951 = vmatprep.subr.bf16.mxu0 %v3064_v56 }
 0x6fd   : > { %2864 = vmatmul.mubr.msk.bf16.vlgmr.msra.gmra.mrb[24].mxu0 %vm729_vm0, %v1539_v55 }
 0x6fe   : > { %2884 = vmatprep.mubr.msk.f32.mxu0 %vm3060_vm1, %v3059_v8 }
 0x726   : > { %v3372_v0 = vpop.f32.mrb[12].mxu1 }
 0x727   : > { %v2838_v1 = vpop.f32.mrb[13].mxu1 }
 0x728   : > { %v1380_v2 = vpop.f32.mrb[14].mxu1 }
 0x729   : > { %v2839_v3 = vpop.f32.mrb[15].mxu1 }
 0x72e   : > { %v1596_v4 = vpop.f32.mrb[16].mxu1 }
 0x72f   : > { %v2857_v5 = vpop.f32.mrb[17].mxu1  ;;  %v1597_v7 = vadd.f32 %v3258_v26, %v1596_v4 }
 0x730   : > { %v1599_v6 = vpop.f32.mrb[18].mxu1 }
 0x731   : > { %v1600_v9 = vadd.f32 %v3258_v26, %v1599_v6  ;;  %v2858_v10 = vpop.f32.mrb[19].mxu1 }
 0x733   : > { %v2948_v12 = vpack.c.bf16 %v1600_v9, %v1597_v7  ;;  %v2980_v13 = vpack.i.bf16 %v1600_v9, %v1597_v7 }
 0x735   : > { %2950 = vmatpush3.bf16.xpose.msk.msra.mxu1 %vm3378_vm7, %v2948_v12  ;;  %2981 = vrot.lane.b32.xlu1 %v2980_v13, %s3590_s25 }
 0x736   : > { %2874 = vmatprep.subr.bf16.mxu1 %v3059_v8 }
 0x73c   : > { %2872 = vmatmul.mubr.msk.f32.vlgmr.msra.gmra.mrb[10].mxu1 %vm959_vm2, %v3331_v41 }
 0x73d   : > { %2876 = vmatprep.mubr.msk.bf16.mxu1 %vm3060_vm1, %v3059_v8 }
 0x7a7   : > { %v2982_v26 = vpop.permute.xlu1 %2981 }
 0x7a8   : > { %v2984_v14 = vunpack.i.h.bf16 %v2982_v26  ;;  %v2983_v15 = vunpack.i.l.bf16 %v2982_v26 }
 0x7aa   : > { %v2952_v16 = vpack.c.bf16 %v2984_v14, %v2983_v15 }
 0x7ac   : > { %2954 = vmatpush3.bf16.xpose.msk.msra.mxu0 %vm3378_vm7, %v2952_v16 }
 0x7ad   : > { %2887 = vmatprep.subr.bf16.mxu0 %v3059_v8 }
 0x7b3   : > { %2885 = vmatmul.mubr.msk.f32.vlgmr.msra.gmra.mrb[18].mxu0 %vm959_vm2, %v1807_v17 }
 0x7b4   : > { %2889 = vmatprep.mubr.msk.bf16.mxu0 %vm3060_vm1, %v3059_v8 }
 0x7c8   : > { %v3396_v18 = vpop.f32.mrb[20].mxu0 }
 0x7c9   : > { %v2849_v19 = vpop.f32.mrb[21].mxu0 }
 0x7ca   : > { %v1524_v20 = vpop.f32.mrb[22].mxu0 }
 0x7cb   : > { %v2850_v21 = vpop.f32.mrb[23].mxu0 }
 0x7d0   : > { %v1660_v23 = vpop.f32.mrb[24].mxu0 }
 0x7d1   : > { %v1661_v24 = vadd.f32 %v3279_v40, %v1660_v23  ;;  %v2865_v25 = vpop.f32.mrb[25].mxu0 }
 0x7d2   : > { %v1663_v27 = vpop.f32.mrb[26].mxu0 }
 0x7d3   : > { %v1664_v28 = vadd.f32 %v3279_v40, %v1663_v27  ;;  %v2866_v29 = vpop.f32.mrb[27].mxu0 }
 0x7d5   : > { %v3400_v31 = vpack.c.bf16 %v1664_v28, %v1661_v24 }
 0x7d7   : > { %2875 = vmatpush3.bf16.msra.mxu1 %v3400_v31 }
 0x7d8   : > { %2955 = vmatprep.subr.bf16.mxu1 %v3064_v56 }
 0x80f   : > { %v1742_v32 = vpop.f32.mrb[10].mxu1 }
 0x810   : > { %v2873_v33 = vpop.f32.mrb[11].mxu1  ;;  %v1747_v34 = vsel %vm1746_vm8, %v1742_v32, -inf }
 0x811   : > { %1748 = vmax.xlane.f32.xlu1 %v1747_v34 }
 0x822   : > { %1902 = vrot.lane.b32.xlu1 %v3400_v31, %s3590_s25  ;;  %s3592_s25 = sld [smem:[#allocation9_spill]] }
 0x826   : > { %2991 = vrot.lane.b32.xlu1 %v2980_v13, %s3587_s28 }
 0x886   : > { %v1884_v35 = vpop.f32.mrb[18].mxu0 }
 0x887   : > { %v2886_v40 = vpop.f32.mrb[19].mxu0  ;;  %v1888_v36 = vsel %vm1746_vm8, %v1884_v35, -inf }
 0x888   : > { %1889 = vmax.xlane.f32.xlu0 %v1888_v36 }
 0x89e   : > { %v1749_v38 = vpop.xlane.xlu1 %1748  ;;  %2986 = vrot.lane.b32.xlu0 %v2980_v13, %s3591_s2 }
 0x89f   : > { %v1750_v39 = vsub.f32 %v1742_v32, %v1749_v38 }
 0x8a1   : > { %v1751_v42 = vmul.f32 1.442695, %v1750_v39 }
 0x8a2   : > { %v1903_v43 = vpop.permute.xlu1 %1902 }
 0x8a3   : > { %3031 = vpow2.f32 %v1751_v42  ;;  %2888 = vmatpush3.bf16.msra.mxu0 %v1903_v43 }
 0x8a4   : > { %2959 = vmatprep.subr.bf16.mxu0 %v3064_v56 }
 0x8a6   : > { %v2992_v51 = vpop.permute.xlu1 %2991 }
 0x8a7   : > { %v2994_v62 = vunpack.i.h.bf16 %v2992_v51  ;;  %v2993_v63 = vunpack.i.l.bf16 %v2992_v51 }
 0x8a9   : > { %v2960_v2 = vpack.c.bf16 %v2994_v62, %v2993_v63  ;;  %v2700_v62 = vld [vmem:[%s3551_s10] ss:$0 sm:$0xff] }
 0x8ad   : > { %v3032_v44 = vpop.eup %3031 }
 0x8ae   : > { %v1753_v46 = vsel %vm1746_vm8, %v3032_v44, 0.0 }
 0x8af   : > { %1754 = vadd.xlane.f32.xlu1 %v1753_v46 }
 0x915   : > { %v1890_v47 = vpop.xlane.xlu0 %1889 }
 0x916   : > { %v1891_v48 = vsub.f32 %v1884_v35, %v1890_v47 }
 0x918   : > { %v1892_v49 = vmul.f32 1.442695, %v1891_v48 }
 0x919   : > { %v2987_v53 = vpop.permute.xlu0 %2986 }
 0x91a   : > { %3033 = vpow2.f32 %v1892_v49  ;;  %v2989_v55 = vunpack.i.h.bf16 %v2987_v53  ;;  %v2988_v56 = vunpack.i.l.bf16 %v2987_v53  ;;  %v3005_v53 = vld [vmem:[%s3592_s25] sm:$0xff]  }
 0x91c   : > { %v2956_v59 = vpack.c.bf16 %v2989_v55, %v2988_v56 }
 0x924   : > { %v3034_v37 = vpop.eup %3033 }
 0x925   : > { %v1894_v50 = vsel %vm1746_vm8, %v3034_v37, 0.0 }
 0x926   : > { %1895 = vadd.xlane.f32.xlu1 %v1894_v50 }
 0x937   : > { %1954 = vrot.lane.b32.xlu1 %v3331_v41, %s3591_s2 }
 0x93b   : > { %2101 = vrot.lane.b32.xlu1 %v3331_v41, %s3587_s28 }
 0x93c   : > { %v1755_v52 = vpop.xlane.xlu1 %1754 }
 0x93d   : > { %3035 = vrcp.f32 %v1755_v52 }
 0x947   : > { %v3036_v54 = vpop.eup %3035 }
 0x948   : > { %v3417_v57 = vmul.f32 %v3036_v54, %v3032_v44  ;;  %v3006_v54 = vld [vmem:[%s3592_s25 + $0x8] sm:$0xff]  }
 0x94a   : > { %v1758_v58 = vpack.c.bf16 %v3417_v57, %v3417_v57 }
 0x94c   : > { %2877 = vmatmul.mubr.msk.bf16.vlgmr.msra.gmra.mrb[20].mxu1 %vm1760_vm9, %v1758_v58 }
 0x94d   : > { %2958 = vmatpush3.bf16.xpose.msk.msra.mxu1 %vm3378_vm7, %v2956_v59  ;;  %2897 = vmatprep.mubr.msk.f32.mxu1 %vm3060_vm1, %v3059_v8 }
 0x94e   : > { %2900 = vmatprep.subr.bf16.mxu1 %v3059_v8 }
 0x9b3   : > { %v1896_v41 = vpop.xlane.xlu1 %1895 }
 0x9b4   : > { %3037 = vrcp.f32 %v1896_v41 }
 0x9b7   : > { %v1955_v60 = vpop.permute.xlu1 %1954 }
 0x9b8   : > { %2898 = vmatmul.mubr.msk.f32.vlgmr.msra.gmra.mrb[24].mxu1 %vm959_vm2, %v1955_v60 }
 0x9b9   : > { %2902 = vmatprep.mubr.msk.bf16.mxu1 %vm3060_vm1, %v3059_v8 }
 0x9bb   : > { %v2102_v3 = vpop.permute.xlu1 %2101 }
 0x9be   : > { %v3038_v61 = vpop.eup %3037 }
 0x9bf   : > { %v3430_v45 = vmul.f32 %v3038_v61, %v3034_v37 }
 0x9c1   : > { %v1900_v1 = vpack.c.bf16 %v3430_v45, %v3430_v45  ;;  %v1899_v38 = vadd.f32 %v3430_v45, %v3417_v57 }
 0x9c3   : > { %2890 = vmatmul.mubr.msk.bf16.vlgmr.msra.gmra.mrb[28].mxu0 %vm1760_vm9, %v1900_v1 }
 0x9c4   : > { %2962 = vmatpush3.bf16.xpose.msk.msra.mxu0 %vm3378_vm7, %v2960_v2  ;;  %2910 = vmatprep.mubr.msk.f32.mxu0 %vm3060_vm1, %v3059_v8 }
 0x9c5   : > { %2913 = vmatprep.subr.bf16.mxu0 %v3059_v8 }
 0x9cb   : > { %2911 = vmatmul.mubr.msk.f32.vlgmr.msra.gmra.mrb[32].mxu0 %vm959_vm2, %v2102_v3  ;;  %vm2246_vm2 = vcmask 259264  }
 0x9cc   : > { %2915 = vmatprep.mubr.msk.bf16.mxu0 %vm3060_vm1, %v3059_v8 }
 0xa1f   : > { %v1798_v4 = vpop.f32.mrb[20].mxu1 }
 0xa20   : > { %1805 = vst.msk [vmem:[#allocation2 + $0x2] sm:$0x3f] %vm1804_vm10, %v1798_v4  ;;  %v2878_v5 = vpop.f32.mrb[21].mxu1 }
 0xa21   : > { %v1801_v6 = vpop.f32.mrb[22].mxu1 }
 0xa22   : > { %v2879_v7 = vpop.f32.mrb[23].mxu1 }
 0xa8b   : > { %v2032_v9 = vpop.f32.mrb[24].mxu1 }
 0xa8c   : > { %v2899_v10 = vpop.f32.mrb[25].mxu1  ;;  %v2036_v11 = vsel %vm1746_vm8, %v2032_v9, -inf }
 0xa8d   : > { %2037 = vmax.xlane.f32.xlu1 %v2036_v11 }
 0xa96   : > { %v1942_v12 = vpop.f32.mrb[28].mxu0 }
 0xa97   : > { %v2891_v13 = vpop.f32.mrb[29].mxu0 }
 0xa98   : > { %v1945_v26 = vpop.f32.mrb[30].mxu0  ;;  %v3008_v13 = vld [vmem:[%s3552_s11 + $0x8] sm:$0xff]  }
 0xa99   : > { %v2892_v14 = vpop.f32.mrb[31].mxu0  ;;  %v3010_v26 = vld [vmem:[%s3554_s13 + $0x8] sm:$0xff]  }
 0xa9e   : > { %v2179_v15 = vpop.f32.mrb[32].mxu0 }
 0xa9f   : > { %v2912_v16 = vpop.f32.mrb[33].mxu0  ;;  %v2183_v17 = vsel %vm1746_vm8, %v2179_v15, -inf }
 0xaa0   : > { %2184 = vmax.xlane.f32.xlu0 %v2183_v17 }
 0xb1a   : > { %v2038_v19 = vpop.xlane.xlu1 %2037 }
 0xb1b   : > { %v2039_v20 = vsub.f32 %v2032_v9, %v2038_v19  ;;  %v2704_v19 = vld [vmem:[%s3558_s17] ss:$0 sm:$0xff] }
 0xb1d   : > { %v2040_v21 = vmul.f32 1.442695, %v2039_v20 }
 0xb1f   : > { %3039 = vpow2.f32 %v2040_v21  ;;  %v2705_v21 = vld [vmem:[%s3559_s18] ss:$0 sm:$0xff] }
 0xb29   : > { %v3040_v23 = vpop.eup %3039 }
 0xb2a   : > { %v2042_v24 = vsel %vm1746_vm8, %v3040_v23, 0.0 }
 0xb2b   : > { %2043 = vadd.xlane.f32.xlu0 %v2042_v24 }
 0xb2d   : > { %v2185_v25 = vpop.xlane.xlu0 %2184 }
 0xb2e   : > { %v2186_v27 = vsub.f32 %v2179_v15, %v2185_v25 }
 0xb30   : > { %v2187_v28 = vmul.f32 1.442695, %v2186_v27  ;;  %v3011_v27 = vld [vmem:[%s3554_s13 + $0x10] sm:$0xff]  }
 0xb32   : > { %3041 = vpow2.f32 %v2187_v28  ;;  %v3012_v28 = vld [vmem:[%s3554_s13 + $0x18] sm:$0xff]  }
 0xb3c   : > { %v3042_v29 = vpop.eup %3041 }
 0xb3d   : > { %v2189_v32 = vsel %vm1746_vm8, %v3042_v29, 0.0 }
 0xb3e   : > { %2190 = vadd.xlane.f32.xlu1 %v2189_v32 }
 0xb41   : > { %2049 = vrot.lane.b32.xlu0 %v3400_v31, %s3591_s2 }
 0xb45   : > { %1949 = vrot.lane.b32.xlu0 %v1942_v12, %s3065_s27  ;;  %v3007_v12 = vld [vmem:[%s3552_s11] sm:$0xff]  }
 0xb4f   : > { %2196 = vrot.lane.b32.xlu1 %v3400_v31, %s3587_s28  ;;  %s722_s28 = scalar_lea.vmem %s3562_s21, %s3194_s29 }
 0xb53   : > { %1240 = vrot.lane.b32.xlu1 %v3326_v30, %s3065_s27 }
 0xb57   : > { %1384 = vrot.lane.b32.xlu1 %v3372_v0, %s3066_s4 }
 0xb5b   : > { %1528 = vrot.lane.b32.xlu1 %v3396_v18, %s3067_s0 }
 0xbb8   : > { %v2044_v33 = vpop.xlane.xlu0 %2043 }
 0xbb9   : > { %3043 = vrcp.f32 %v2044_v33 }
 0xbbc   : > { %v2050_v34 = vpop.permute.xlu0 %2049 }
 0xbbd   : > { %2901 = vmatpush3.bf16.msra.mxu1 %v2050_v34 }
 0xbbe   : > { %2919 = vmatprep.subr.bf16.mxu1 %v3059_v8 }
 0xbc0   : > { %v1950_v35 = vpop.permute.xlu0 %1949 }
 0xbc1   : > { %1953 = vst.msk [vmem:[#allocation2 + $0x2] sm:$0x3f] %vm1952_vm11, %v1950_v35 }
 0xbc3   : > { %v3044_v31 = vpop.eup %3043 }
 0xbc4   : > { %v2046_v40 = vmul.f32 %v3044_v31, %v3040_v23 }
 0xbc6   : > { %v2048_v30 = vpack.c.bf16 %v2046_v40, %v2046_v40  ;;  %v2047_v42 = vadd.f32 %v2046_v40, %v1899_v38 }
 0xbc8   : > { %2903 = vmatmul.mubr.msk.bf16.vlgmr.msra.gmra.mrb[28].mxu1 %vm1760_vm9, %v2048_v30 }
 0xbc9   : > { %2923 = vmatprep.mubr.msk.bf16.mxu1 %vm3060_vm1, %v3059_v8  ;;  %2920 = vmatpush3.bf16.msra.mxu1 %v3005_v53  ;;  %v2716_v53 = vld [vmem:[%s3560_s19] ss:$0 sm:$0xff] }
 0xbca   : > { %2921 = vmatprep.subr.bf16.mxu1 %v3059_v8 }
 0xbcb   : > { %v2191_v0 = vpop.xlane.xlu1 %2190 }
 0xbcc   : > { %3045 = vrcp.f32 %v2191_v0 }
 0xbcd   : > { %2922 = vmatpush3.bf16.msra.mxu1 %v3006_v54 }
 0xbce   : > { %2935 = vmatprep.subr.bf16.mxu1 %v3059_v8 }
 0xbcf   : > { %v2197_v18 = vpop.permute.xlu1 %2196 }
 0xbd0   : > { %2914 = vmatpush3.bf16.msra.mxu0 %v2197_v18 }
 0xbd1   : > { %2927 = vmatprep.subr.bf16.mxu0 %v3059_v8 }
 0xbd3   : > { %v1241_v36 = vpop.permute.xlu1 %1240 }
 0xbd4   : > { %1244 = vst.msk [vmem:[#allocation2] sm:$0x3] %vm1243_vm12, %v1241_v36 }
 0xbd6   : > { %v3046_v39 = vpop.eup %3045 }
 0xbd7   : > { %v2193_v43 = vmul.f32 %v3046_v39, %v3042_v29  ;;  %v1385_v44 = vpop.permute.xlu1 %1384  ;;  %v2706_v29 = vld [vmem:[%s3553_s12] ss:$0 sm:$0xff] }
 0xbd8   : > { %1388 = vst.msk [vmem:[#allocation2] sm:$0x3] %vm1387_vm13, %v1385_v44 }
 0xbd9   : > { %v2194_v46 = vadd.f32 %v2193_v43, %v2047_v42  ;;  %v2195_v47 = vpack.c.bf16 %v2193_v43, %v2193_v43 }
 0xbdb   : > { %v2529_v48 = vmul.f32 0.25, %v2194_v46  ;;  %2916 = vmatmul.mubr.msk.bf16.vlgmr.msra.gmra.mrb[36].mxu0 %vm1760_vm9, %v2195_v47  ;;  %v1529_v49 = vpop.permute.xlu1 %1528 }
 0xbdc   : > { %1532 = vst.msk [vmem:[#allocation2] sm:$0x3] %vm1531_vm14, %v1529_v49  ;;  %2931 = vmatprep.mubr.msk.bf16.mxu0 %vm3060_vm1, %v3059_v8  ;;  %2928 = vmatpush3.bf16.msra.mxu0 %v3007_v12 }
 0xbdd   : > { %2530 = vst.msk [vmem:[%s726_s1] sm:$0x3f] %vm1746_vm8, %v2529_v48  ;;  %2929 = vmatprep.subr.bf16.mxu0 %v3059_v8 }
 0xbe0   : > { %2930 = vmatpush3.bf16.msra.mxu0 %v3008_v13 }
 0xc9b   : > { %v2089_v37 = vpop.f32.mrb[28].mxu1 }
 0xc9c   : > { %2096 = vrot.lane.b32.xlu0 %v2089_v37, %s3066_s4  ;;  %v2904_v50 = vpop.f32.mrb[29].mxu1 }
 0xc9d   : > { %v2092_v51 = vpop.f32.mrb[30].mxu1 }
 0xc9e   : > { %v2905_v52 = vpop.f32.mrb[31].mxu1 }
 0xcae   : > { %v2236_v55 = vpop.f32.mrb[36].mxu0 }
 0xcaf   : > { %2243 = vrot.lane.b32.xlu0 %v2236_v55, %s3067_s0  ;;  %v2917_v56 = vpop.f32.mrb[37].mxu0  ;;  %v2717_v55 = vld [vmem:[%s3561_s20] ss:$0 sm:$0xff] }
 0xcb0   : > { %v2239_v57 = vpop.f32.mrb[38].mxu0 }
 0xcb1   : > { %v2918_v58 = vpop.f32.mrb[39].mxu0 }
 0xd0e   : > { %v2097_v59 = vpop.permute.xlu0 %2096 }
 0xd0f   : > { %2100 = vst.msk [vmem:[#allocation2 + $0x2] sm:$0x3f] %vm2099_vm15, %v2097_v59 }
 0xd21   : > { %v2244_v41 = vpop.permute.xlu0 %2243 }
 0xd22   : > { %2247 = vst.msk [vmem:[#allocation2 + $0x2] sm:$0x3f] %vm2246_vm2, %v2244_v41 }
 0xd29   : > { %v2248_v60 = vld [vmem:[#allocation2] sm:$0xff] }
 0xd2a   : > { %v2253_v61 = vpack.c.bf16 %v2248_v60, %v2248_v60 }
 0xd2c   : > { %2924 = vmatmul.mubr.msk.bf16.vlgmr.msra.gmra.mrb[32].mxu1 %vm729_vm0, %v2253_v61 }
 0xd2d   : > { %2943 = vmatprep.mubr.msk.bf16.mxu1 %vm3060_vm1, %v3059_v8  ;;  %vm2454_vm1 = vcmask 523264  }
 0xdff   : > { %v2310_v63 = vpop.f32.mrb[32].mxu1 }
 0xe00   : > { %v2311_v45 = vadd.f32 %v2700_v62, %v2310_v63  ;;  %v2925_v1 = vpop.f32.mrb[33].mxu1 }
 0xe01   : > { %v2313_v2 = vpop.f32.mrb[34].mxu1 }
 0xe02   : > { %v2926_v3 = vpop.f32.mrb[35].mxu1  ;;  %v2316_v4 = vadd.f32 %v2311_v45, %v3237_v22  ;;  %v3009_v22 = vld [vmem:[%s3554_s13] sm:$0xff]  }
 0xe03   : > { %2936 = vmatpush3.bf16.msra.mxu1 %v3009_v22 }
 0xe04   : > { %v2317_v5 = vsel %vm729_vm0, %v2316_v4, 0.0  ;;  %2937 = vmatprep.subr.bf16.mxu1 %v3059_v8 }
 0xe05   : > { %2318 = vadd.xlane.f32.xlu1 %v2317_v5 }
 0xe07   : > { %2938 = vmatpush3.bf16.msra.mxu1 %v3010_v26 }
 0xe08   : > { %2939 = vmatprep.subr.bf16.mxu1 %v3059_v8 }
 0xe0b   : > { %2940 = vmatpush3.bf16.msra.mxu1 %v3011_v27 }
 0xe0c   : > { %2941 = vmatprep.subr.bf16.mxu1 %v3059_v8  ;;  %v2710_v8 = vld [vmem:[%s3555_s14] ss:$0 sm:$0xff] }
 0xe0f   : > { %2942 = vmatpush3.bf16.msra.mxu1 %v3012_v28 }
 0xe92   : > { %v2319_v6 = vpop.xlane.xlu1 %2318 }
 0xe93   : > { %v2320_v7 = vmul.f32 0.03125, %v2319_v6 }
 0xe95   : > { %v2321_v9 = vsub.f32 %v2316_v4, %v2320_v7 }
 0xe97   : > { %v2322_v10 = vmul.f32 %v2321_v9, %v2321_v9 }
 0xe99   : > { %v2323_v11 = vsel %vm729_vm0, %v2322_v10, 0.0 }
 0xe9a   : > { %2324 = vadd.xlane.f32.xlu0 %v2323_v11 }
 0xf27   : > { %v2325_v14 = vpop.xlane.xlu0 %2324 }
 0xf28   : > { %v2326_v15 = vmul.f32 0.03125, %v2325_v14 }
 0xf2a   : > { %v2327_v16 = vadd.f32 1e-05, %v2326_v15 }
 0xf2c   : > { %3047 = vrsqrt.f32 %v2327_v16 }
 0xf36   : > { %v3048_v17 = vpop.eup %3047 }
 0xf37   : > { %v2329_v20 = vmul.f32 %v3048_v17, %v2321_v9 }
 0xf39   : > { %v2337_v23 = vmul.f32 %v2704_v19, %v2329_v20 }
 0xf3b   : > { %v2345_v24 = vadd.f32 %v2705_v21, %v2337_v23 }
 0xf3d   : > { %v2350_v25 = vpack.c.bf16 %v2345_v24, %v2345_v24 }
 0xf3f   : > { %2932 = vmatmul.mubr.msk.bf16.vlgmr.msra.gmra.mrb[40].mxu0 %vm729_vm0, %v2350_v25 }
0x1012   : > { %v2407_v32 = vpop.f32.mrb[40].mxu0 }
0x1013   : > { %v2408_v33 = vadd.f32 %v2706_v29, %v2407_v32  ;;  %v2933_v34 = vpop.f32.mrb[41].mxu0 }
0x1014   : > { %v2410_v35 = vpop.f32.mrb[42].mxu0 }
0x1015   : > { %v2413_v31 = vmax.f32 %v2408_v33, 0.0  ;;  %v2934_v40 = vpop.f32.mrb[43].mxu0 }
0x1017   : > { %v2422_v30 = vpack.c.bf16 %v2413_v31, %v2413_v31 }
0x1019   : > { %2944 = vmatmul.mubr.msk.bf16.vlgmr.msra.gmra.mrb[36].mxu1 %vm2454_vm1, %v2422_v30 }
0x10ec   : > { %v2492_v0 = vpop.f32.mrb[36].mxu1 }
0x10ed   : > { %v2493_v18 = vadd.f32 %v2710_v8, %v2492_v0  ;;  %v2945_v36 = vpop.f32.mrb[37].mxu1 }
0x10ee   : > { %v2495_v38 = vpop.f32.mrb[38].mxu1 }
0x10ef   : > { %v2946_v39 = vpop.f32.mrb[39].mxu1  ;;  %v2498_v42 = vadd.f32 %v2493_v18, %v2345_v24 }
0x10f1   : > { %v2499_v43 = vsel %vm729_vm0, %v2498_v42, 0.0 }
0x10f2   : > { %2500 = vadd.xlane.f32.xlu0 %v2499_v43 }
0x117f   : > { %v2501_v44 = vpop.xlane.xlu0 %2500 }
0x1180   : > { %v2502_v46 = vmul.f32 0.03125, %v2501_v44 }
0x1182   : > { %v2503_v47 = vsub.f32 %v2498_v42, %v2502_v46 }
0x1184   : > { %v2504_v48 = vmul.f32 %v2503_v47, %v2503_v47 }
0x1186   : > { %v2505_v49 = vsel %vm729_vm0, %v2504_v48, 0.0 }
0x1187   : > { %2506 = vadd.xlane.f32.xlu1 %v2505_v49 }
0x1214   : > { %v2507_v37 = vpop.xlane.xlu1 %2506 }
0x1215   : > { %v2508_v50 = vmul.f32 0.03125, %v2507_v37 }
0x1217   : > { %v2509_v51 = vadd.f32 1e-05, %v2508_v50 }
0x1219   : > { %3049 = vrsqrt.f32 %v2509_v51 }
0x1223   : > { %v3050_v52 = vpop.eup %3049 }
0x1224   : > { %v2511_v54 = vmul.f32 %v3050_v52, %v2503_v47 }
0x1226   : > { %v2519_v56 = vmul.f32 %v2716_v53, %v2511_v54 }
0x1228   : > { %v2527_v57 = vadd.f32 %v2717_v55, %v2519_v56 }
0x122a   : > { %2528 = vst.msk [vmem:[%s722_s28] sm:$0xff] %vm729_vm0, %v2527_v57 }
0x122b PF: > { %s33_s3 = sadd.s32 1, %s3057_s3  }
0x122c   : > { %p30_p4 = scmp.ge.s32.totalorder %s33_s3, 4  }
0x122e   :  { %32 = sbr.rel (!%p30_p4) target bundleno = 8 (0x8), region = 152 }

</bundles_post_ra>
